<compile_context>
chip_gen: v7x
topology: tpu7x:2x2x1
jax: 0.10.0
libtpu: 0.0.40
codegen_flags: <defaults>
</compile_context>

<pallas_src>
import functools

import jax
import jax.numpy as jnp
from jax.experimental import pallas as pl
from jax.experimental.pallas import tpu as pltpu


# ----------------------------------------------------------------------------
# kernel
# ----------------------------------------------------------------------------
def _make_kernel(A: int, TQH: int, QW: int):
    """A: taps per phase per axis; TQH: output-row tile (phase rows); QW: phase cols."""

    def kernel(x_ref, w_ref, b_ref, o_ref):
        # x_ref: (1, Hp, Wp, Cin)        padded input frame (VMEM-resident per n)
        # w_ref: (A*A*Cin, NCOL)         fused polyphase weight, matmul-ready 2D
        # b_ref: (1, NCOL)               fused bias (f32)
        # o_ref: (1, TQH, QW, NCOL)      output row tile, 4 phases fused on lanes
        t = pl.program_id(1)
        row0 = t * TQH
        # Row window incl. halo (A-1 rows); major-axis slice => cheap addressing.
        win = x_ref[0, pl.ds(row0, TQH + A - 1)]            # (TQH+A-1, Wp, Cin)

        # Single im2col build: A*A shifted windows concatenated on the lane axis.
        cols = [win[a:a + TQH, b:b + QW, :]
                for a in range(A) for b in range(A)]
        patches = jnp.concatenate(cols, axis=-1)             # (TQH, QW, A*A*Cin)

        # One MXU pass: taps folded into K, all 4 output phases fused into N.
        acc = jax.lax.dot_general(
            patches, w_ref[...],
            dimension_numbers=(((2,), (0,)), ((), ())),
            preferred_element_type=jnp.float32)               # (TQH, QW, NCOL) f32
        acc = acc + b_ref[...]                                # f32 bias add
        o_ref[0] = acc.astype(o_ref.dtype)

    return kernel


# ----------------------------------------------------------------------------
# host-side helpers
# ----------------------------------------------------------------------------
def _vmem_limit_bytes() -> int:
    """Generation-aware VMEM ceiling (~80% of physical), safe fallback 64 MiB."""
    cap = None
    try:
        info = pltpu.get_tpu_info()
        for name in ("vmem_capacity_bytes", "vmem_size_bytes", "vmem_bytes"):
            v = getattr(info, name, None)
            if v:
                cap = int(v)
                break
    except Exception:
        cap = None
    if not cap:
        cap = 64 * 1024 * 1024        # conservative (v7x-sized) default
    return max(int(cap * 0.8), 32 * 1024 * 1024)


def _choose_row_tile(QH, QW, Wp, Cin, K, ncol_pad, A, in_item, out_item,
                     vmem_budget, buf_in, buf_w):
    """Largest row tile whose per-step footprint fits the VMEM budget."""

    def vmem_bytes(tqh):
        t = -(-QH // tqh)
        qh_pad = t * tqh
        hp = qh_pad + A - 1
        frame = hp * Wp * Cin * in_item * buf_in            # per-n input frame
        weight = K * ncol_pad * in_item * buf_w
        bias = ncol_pad * 4 * buf_w
        out_blk = tqh * QW * ncol_pad * out_item * 2        # double-buffered out
        win = (tqh + A - 1) * Wp * Cin * in_item            # in-kernel temporaries
        patches = tqh * QW * K * in_item
        acc = tqh * QW * ncol_pad * 4
        return frame + weight + bias + out_blk + win + patches + acc

    # Prefer >=2 row tiles per frame when it is tall enough, so the pipeline
    # (and v7x's second TensorCore when N is small) has work; otherwise take it
    # as large as the VMEM budget allows (per-grid-step overhead ~0.35 us).
    cap = QH if QH < 16 else -(-QH // 2)
    tqh = cap
    while tqh > 1 and vmem_bytes(tqh) > vmem_budget:
        tqh -= 1
    return max(1, tqh)


_SINGLE_BUFFER_OK = None


def _single_buffer_supported() -> bool:
    """Probe once whether pipeline_mode=pl.Buffered(1) lowers on this install."""
    global _SINGLE_BUFFER_OK
    if _SINGLE_BUFFER_OK is None:
        try:
            def _copy(x_ref, o_ref):
                o_ref[...] = x_ref[...]

            spec = pl.BlockSpec((8, 128), lambda i: (0, 0),
                                pipeline_mode=pl.Buffered(1))
            f = pl.pallas_call(
                _copy,
                out_shape=jax.ShapeDtypeStruct((8, 128), jnp.float32),
                grid=(2,),
                in_specs=[spec],
                out_specs=pl.BlockSpec((8, 128), lambda i: (0, 0)))
            jax.block_until_ready(f(jnp.zeros((8, 128), jnp.float32)))
            _SINGLE_BUFFER_OK = True
        except Exception:
            _SINGLE_BUFFER_OK = False
    return _SINGLE_BUFFER_OK


def _pack_polyphase_weight(weight_pt, A, ks, ncol_pad, dtype):
    """(Cin, Cout, ks, ks) -> (A*A*Cin, ncol_pad) fused sub-pixel weight.

    Row index    = (a*A + b)*Cin + ci         (tap, input channel)
    Column index = (p*2 + r)*Cout + co        (output phase, output channel)
    with kh = p + 2*(A-1-a), kw = r + 2*(A-1-b); taps with kh/kw >= ks are zero.
    """
    Cin, Cout = weight_pt.shape[0], weight_pt.shape[1]
    zero = jnp.zeros((Cin, Cout), weight_pt.dtype)
    rows = []
    for a in range(A):
        for b in range(A):
            cols = []
            for p in range(2):
                for r in range(2):
                    kh = p + 2 * (A - 1 - a)
                    kw = r + 2 * (A - 1 - b)
                    ok = (kh < ks) and (kw < ks)
                    cols.append(weight_pt[:, :, kh, kw] if ok else zero)
            rows.append(jnp.concatenate(cols, axis=1))       # (Cin, 4*Cout)
    w2 = jnp.concatenate(rows, axis=0)                       # (A*A*Cin, 4*Cout)
    ncol = 4 * Cout
    if ncol_pad > ncol:
        w2 = jnp.pad(w2, ((0, 0), (0, ncol_pad - ncol)))     # zero cols -> lane-dense
    return w2.astype(dtype)


# ----------------------------------------------------------------------------
# wrapper
# ----------------------------------------------------------------------------
@functools.partial(jax.jit, static_argnames=("ks", "compute_dtype", "row_tile",
                                              "single_buffer", "data_format"))
def _transposed_upsample_impl(x_in, weight_pt, bias, *, ks, compute_dtype,
                              row_tile, single_buffer, data_format):
    stride = 2                                   # module hard-codes stride=2
    if ks % 2 != 1:
        raise NotImplementedError("polyphase packing only validated for odd ks")

    if data_format == "NCHW":
        N, Cin, H, W = x_in.shape
        x = jnp.transpose(x_in, (0, 2, 3, 1))
    else:                                        # "NHWC"
        N, H, W, Cin = x_in.shape
        x = x_in
    Cout = weight_pt.shape[1]
    A = (ks + 1) // 2                            # taps per phase per axis (3 for ks=5)
    pad = A - 1
    QH, QW = H + A - 1, W + A - 1                # phase-space output extent
    OH, OW = (H - 1) * stride + ks, (W - 1) * stride + ks
    ncol = stride * stride * Cout                # 4 phases fused on the lane axis
    # Pad the fused channel axis to 128 lanes only when it is already wide; for
    # small Cout store exactly ncol lanes (masked stores, 1x HBM traffic).
    ncol_pad = (-(-ncol // 128) * 128) if ncol >= 128 else ncol

    cdt = jnp.dtype(compute_dtype)
    out_dt = x_in.dtype
    in_item = cdt.itemsize
    out_item = jnp.dtype(out_dt).itemsize
    K = A * A * Cin
    Wp = W + 2 * pad

    vmem_limit = _vmem_limit_bytes()
    buf_w = 1 if single_buffer else 2
    TQH = row_tile if row_tile is not None else _choose_row_tile(
        QH, QW, Wp, Cin, K, ncol_pad, A, in_item, out_item,
        int(vmem_limit * 0.85), buf_in=2, buf_w=buf_w)
    T = -(-QH // TQH)
    QH_pad = T * TQH                              # grid rows (any TQH divides)

    # ---- glue (XLA, once per call): NHWC cast, symmetric pad (+ extra bottom
    #      rows so padded row tiles stay in bounds), matmul-ready weight/bias --
    x = x.astype(cdt)
    xpad = jnp.pad(x, ((0, 0), (pad, pad + (QH_pad - QH)), (pad, pad), (0, 0)))
    Hp = xpad.shape[1]                            # == QH_pad + A - 1

    w2 = _pack_polyphase_weight(weight_pt, A, ks, ncol_pad, cdt)
    b2 = jnp.pad(jnp.tile(bias.astype(jnp.float32), stride * stride),
                 (0, ncol_pad - ncol)).reshape(1, ncol_pad)

    flops = 2 * N * QH_pad * QW * K * ncol_pad
    bytes_accessed = (N * Hp * Wp * Cin * in_item
                      + K * ncol_pad * in_item + ncol_pad * 4
                      + N * QH_pad * QW * ncol_pad * out_item)

    if single_buffer:
        # Grid-invariant operands: no pipelining benefit, halve their VMEM.
        w_spec = pl.BlockSpec((K, ncol_pad), lambda n, t: (0, 0),
                              pipeline_mode=pl.Buffered(1))
        b_spec = pl.BlockSpec((1, ncol_pad), lambda n, t: (0, 0),
                              pipeline_mode=pl.Buffered(1))
    else:
        w_spec = pl.BlockSpec((K, ncol_pad), lambda n, t: (0, 0))
        b_spec = pl.BlockSpec((1, ncol_pad), lambda n, t: (0, 0))

    out = pl.pallas_call(
        _make_kernel(A, TQH, QW),
        out_shape=jax.ShapeDtypeStruct((N, QH_pad, QW, ncol_pad), out_dt),
        grid=(N, T),
        in_specs=[
            # full padded frame; block index depends only on n -> fetched once
            # per batch element, resident across its row tiles.
            pl.BlockSpec((1, Hp, Wp, Cin), lambda n, t: (n, 0, 0, 0)),
            w_spec,
            b_spec,
        ],
        out_specs=pl.BlockSpec((1, TQH, QW, ncol_pad), lambda n, t: (n, t, 0, 0)),
        compiler_params=pltpu.CompilerParams(
            dimension_semantics=("parallel", "parallel"),
            vmem_limit_bytes=vmem_limit),
        cost_estimate=pl.CostEstimate(flops=flops, transcendentals=0,
                                      bytes_accessed=bytes_accessed),
    )(xpad, w2, b2)

    # ---- unpack the 4 phases; single transpose back to the requested layout --
    y = out[..., :ncol].reshape(N, QH_pad, QW, stride, stride, Cout)  # n,qh,qw,p,r,co
    if data_format == "NCHW":
        y = jnp.transpose(y, (0, 5, 1, 3, 2, 4))                      # n,co,qh,p,qw,r
        y = y.reshape(N, Cout, stride * QH_pad, stride * QW)
        return y[:, :, :OH, :OW]
    y = jnp.transpose(y, (0, 1, 3, 2, 4, 5))                          # n,qh,p,qw,r,co
    y = y.reshape(N, stride * QH_pad, stride * QW, Cout)
    return y[:, :OH, :OW, :]


def transposed_upsample(x, weight_pt, bias, *, ks=5, compute_dtype=jnp.bfloat16,
                        row_tile=None, data_format="NCHW"):
    """Equivalent of nn.ConvTranspose2d(Cin, Cout, kernel_size=ks, stride=2)(x).

    x        : (N, Cin, H, W)   (or (N, H, W, Cin) with data_format="NHWC")
    weight_pt: (Cin, Cout, ks, ks)   (PyTorch ConvTranspose2d weight layout)
    bias     : (Cout,)
    returns  : (N, Cout, (H-1)*2+ks, (W-1)*2+ks)   (NHWC if data_format="NHWC")

    compute_dtype defaults to bfloat16 (f32 MXU accumulation is kept); pass
    jnp.float32 for bit-tight results at ~2-3x the matmul cost.
    """
    single_buffer = _single_buffer_supported()
    return _transposed_upsample_impl(
        x, weight_pt, bias, ks=ks, compute_dtype=compute_dtype,
        row_tile=row_tile, single_buffer=single_buffer, data_format=data_format)


# ----------------------------------------------------------------------------
# reference + self-test
# ----------------------------------------------------------------------------
def _reference(x_nchw, weight_pt, bias, *, ks=5, stride=2):
    """Pure-JAX reference: conv_general_dilated with lhs_dilation == ConvTranspose2d."""
    Cout = weight_pt.shape[1]
    w_reg = jnp.transpose(weight_pt, (1, 0, 2, 3))[:, :, ::-1, ::-1]
    out = jax.lax.conv_general_dilated(
        x_nchw, w_reg,
        window_strides=(1, 1),
        padding=[(ks - 1, ks - 1), (ks - 1, ks - 1)],
        lhs_dilation=(stride, stride),
        dimension_numbers=("NCHW", "OIHW", "NCHW"))
    return out + bias.reshape(1, Cout, 1, 1)


if __name__ == "__main__":
    key = jax.random.PRNGKey(0)
    k_x, k_w, k_b = jax.random.split(key, 3)

    N, C, H, W = 2, 4, 16, 16
    ks, stride = 5, 2
    Cout = C  # out_channels defaults to channels

    x = jax.random.normal(k_x, (N, C, H, W), dtype=jnp.float32)
    # ConvTranspose2d.weight: (in_channels, out_channels, ks, ks), bias: (out_channels,)
    fan = C * ks * ks
    bound = 1.0 / (fan ** 0.5)
    weight = jax.random.uniform(k_w, (C, Cout, ks, ks), jnp.float32, -bound, bound)
    bias = jax.random.uniform(k_b, (Cout,), jnp.float32, -bound, bound)

    OH = (H - 1) * stride + ks
    OW = (W - 1) * stride + ks
    ref = _reference(x, weight, bias, ks=ks, stride=stride)

    # f32 operands: tight check against the dilated-conv reference.
    out_f32 = jax.block_until_ready(
        transposed_upsample(x, weight, bias, ks=ks, compute_dtype=jnp.float32))
    assert out_f32.shape == (N, Cout, OH, OW), out_f32.shape
    assert jnp.allclose(out_f32, ref, atol=1e-4, rtol=1e-4), \
        float(jnp.max(jnp.abs(out_f32 - ref)))

    # default path: bf16 MXU operands (f32 accumulation), looser tolerance.
    out_bf16 = jax.block_until_ready(transposed_upsample(x, weight, bias, ks=ks))
    assert out_bf16.shape == (N, Cout, OH, OW), out_bf16.shape
    assert jnp.allclose(out_bf16, ref, atol=5e-2, rtol=5e-2), \
        float(jnp.max(jnp.abs(out_bf16 - ref)))

    print("KERNEL_OK")
</pallas_src>

<mosaic_0001>
module attributes {stable_mosaic.version = 11 : i64} {
  func.func @_copy(%arg0: i32, %arg1: memref<8x128xf32, #tpu.memory_space<vmem>>, %arg2: memref<8x128xf32, #tpu.memory_space<vmem>>) attributes {dimension_semantics = [#tpu.dimension_semantics<arbitrary>], iteration_bounds = array<i64: 2>, scalar_prefetch = 0 : i64, scratch_operands = 0 : i64, tpu.core_type = #tpu.core_type<tc>, window_params = [{pipeline_mode = #tpu.pipeline_mode<synchronous>, transform_indices = @transform_0, window_bounds = array<i64: 8, 128>}, {pipeline_mode = #tpu.pipeline_mode<synchronous>, transform_indices = @transform_1, window_bounds = array<i64: 8, 128>}]} {
    %c0 = arith.constant 0 : index
    %c0_0 = arith.constant 0 : index
    %0 = vector.load %arg1[%c0, %c0_0] : memref<8x128xf32, #tpu.memory_space<vmem>>, vector<8x128xf32>
    %c0_1 = arith.constant 0 : index
    %c0_2 = arith.constant 0 : index
    %1 = vector.load %arg2[%c0_1, %c0_2] : memref<8x128xf32, #tpu.memory_space<vmem>>, vector<8x128xf32>
    tpu.vector_store %arg2[%c0_1, %c0_2], %0 {strides = array<i32>} : memref<8x128xf32, #tpu.memory_space<vmem>>, vector<8x128xf32>,
    return
  }
  func.func @transform_0(%arg0: i32) -> (i32, i32) {
    %c0_i32 = arith.constant 0 : i32
    %c0_i32_0 = arith.constant 0 : i32
    %c0_i32_1 = arith.constant 0 : i32
    return %c0_i32, %c0_i32_0 : i32, i32
  }
  func.func @transform_1(%arg0: i32) -> (i32, i32) {
    %c0_i32 = arith.constant 0 : i32
    %c0_i32_0 = arith.constant 0 : i32
    %c0_i32_1 = arith.constant 0 : i32
    return %c0_i32, %c0_i32_0 : i32, i32
  }
}

module attributes {stable_mosaic.version = 11 : i64} {
  func.func @kernel(%arg0: i32, %arg1: i32, %arg2: memref<1x20x20x4xf32, #tpu.memory_space<vmem>>, %arg3: memref<36x16xf32, #tpu.memory_space<vmem>>, %arg4: memref<1x16xf32, #tpu.memory_space<vmem>>, %arg5: memref<1x9x18x16xf32, #tpu.memory_space<vmem>>) attributes {dimension_semantics = [#tpu.dimension_semantics<parallel>, #tpu.dimension_semantics<parallel>], iteration_bounds = array<i64: 2, 2>, scalar_prefetch = 0 : i64, scratch_operands = 0 : i64, tpu.core_type = #tpu.core_type<tc>, window_params = [{transform_indices = @transform_0, window_bounds = array<i64: 1, 20, 20, 4>}, {pipeline_mode = #tpu.pipeline_mode<synchronous>, transform_indices = @transform_1, window_bounds = array<i64: 36, 16>}, {pipeline_mode = #tpu.pipeline_mode<synchronous>, transform_indices = @transform_2, window_bounds = array<i64: 1, 16>}, {transform_indices = @transform_3, window_bounds = array<i64: 1, 9, 18, 16>}]} {
    %c9_i32 = arith.constant 9 : i32
    %0 = arith.muli %arg1, %c9_i32 : i32
    %c0 = arith.constant 0 : index
    %1 = arith.index_cast %0 : i32 to index
    %c0_0 = arith.constant 0 : index
    %c0_1 = arith.constant 0 : index
    %2 = vector.load %arg2[%c0, %1, %c0_0, %c0_1] : memref<1x20x20x4xf32, #tpu.memory_space<vmem>>, vector<1x11x20x4xf32>
    %3 = vector.shape_cast %2 : vector<1x11x20x4xf32> to vector<11x20x4xf32>
    %4 = vector.extract_strided_slice %3 {offsets = [0, 0, 0], sizes = [9, 18, 4], strides = [1, 1, 1]} : vector<11x20x4xf32> to vector<9x18x4xf32>
    %5 = vector.extract_strided_slice %3 {offsets = [0, 1, 0], sizes = [9, 18, 4], strides = [1, 1, 1]} : vector<11x20x4xf32> to vector<9x18x4xf32>
    %6 = vector.extract_strided_slice %3 {offsets = [0, 2, 0], sizes = [9, 18, 4], strides = [1, 1, 1]} : vector<11x20x4xf32> to vector<9x18x4xf32>
    %7 = vector.extract_strided_slice %3 {offsets = [1, 0, 0], sizes = [9, 18, 4], strides = [1, 1, 1]} : vector<11x20x4xf32> to vector<9x18x4xf32>
    %8 = vector.extract_strided_slice %3 {offsets = [1, 1, 0], sizes = [9, 18, 4], strides = [1, 1, 1]} : vector<11x20x4xf32> to vector<9x18x4xf32>
    %9 = vector.extract_strided_slice %3 {offsets = [1, 2, 0], sizes = [9, 18, 4], strides = [1, 1, 1]} : vector<11x20x4xf32> to vector<9x18x4xf32>
    %10 = vector.extract_strided_slice %3 {offsets = [2, 0, 0], sizes = [9, 18, 4], strides = [1, 1, 1]} : vector<11x20x4xf32> to vector<9x18x4xf32>
    %11 = vector.extract_strided_slice %3 {offsets = [2, 1, 0], sizes = [9, 18, 4], strides = [1, 1, 1]} : vector<11x20x4xf32> to vector<9x18x4xf32>
    %12 = vector.extract_strided_slice %3 {offsets = [2, 2, 0], sizes = [9, 18, 4], strides = [1, 1, 1]} : vector<11x20x4xf32> to vector<9x18x4xf32>
    %13 = tpu.concatenate %4, %5, %6, %7, %8, %9, %10, %11, %12 in 2 : vector<9x18x4xf32>, vector<9x18x4xf32>, vector<9x18x4xf32>, vector<9x18x4xf32>, vector<9x18x4xf32>, vector<9x18x4xf32>, vector<9x18x4xf32>, vector<9x18x4xf32>, vector<9x18x4xf32> -> vector<9x18x36xf32>
    %c0_2 = arith.constant 0 : index
    %c0_3 = arith.constant 0 : index
    %14 = vector.load %arg3[%c0_2, %c0_3] : memref<36x16xf32, #tpu.memory_space<vmem>>, vector<36x16xf32>
    %cst = arith.constant dense<0.000000e+00> : vector<9x18x16xf32>
    %15 = tpu.matmul %13, %14, %cst {dimension_numbers = #tpu.dot_dimension_numbers<[2], [0], [0, 1], [1], [0, 0, 0, 1, 1, 1], [], []>} : vector<9x18x36xf32>, vector<36x16xf32>, vector<9x18x16xf32> -> vector<9x18x16xf32>
    %c0_4 = arith.constant 0 : index
    %c0_5 = arith.constant 0 : index
    %16 = vector.load %arg4[%c0_4, %c0_5] : memref<1x16xf32, #tpu.memory_space<vmem>>, vector<1x16xf32>
    %17 = vector.shape_cast %16 : vector<1x16xf32> to vector<1x1x16xf32>
    %18 = vector.broadcast %17 : vector<1x1x16xf32> to vector<9x18x16xf32>
    %19 = arith.addf %15, %18 : vector<9x18x16xf32>
    %c0_6 = arith.constant 0 : index
    %c0_7 = arith.constant 0 : index
    %c0_8 = arith.constant 0 : index
    %c0_9 = arith.constant 0 : index
    %20 = vector.load %arg5[%c0_6, %c0_7, %c0_8, %c0_9] : memref<1x9x18x16xf32, #tpu.memory_space<vmem>>, vector<1x9x18x16xf32>
    %21 = vector.shape_cast %20 : vector<1x9x18x16xf32> to vector<9x18x16xf32>
    %22 = vector.shape_cast %19 : vector<9x18x16xf32> to vector<1x9x18x16xf32>
    tpu.vector_store %arg5[%c0_6, %c0_7, %c0_8, %c0_9], %22 {strides = array<i32>} : memref<1x9x18x16xf32, #tpu.memory_space<vmem>>, vector<1x9x18x16xf32>,
    return
  }
  func.func @transform_0(%arg0: i32, %arg1: i32) -> (i32, i32, i32, i32) {
    %c0_i32 = arith.constant 0 : i32
    %c0_i32_0 = arith.constant 0 : i32
    %c0_i32_1 = arith.constant 0 : i32
    %c0_i32_2 = arith.constant 0 : i32
    return %arg0, %c0_i32, %c0_i32_0, %c0_i32_1 : i32, i32, i32, i32
  }
  func.func @transform_1(%arg0: i32, %arg1: i32) -> (i32, i32) {
    %c0_i32 = arith.constant 0 : i32
    %c0_i32_0 = arith.constant 0 : i32
    %c0_i32_1 = arith.constant 0 : i32
    return %c0_i32, %c0_i32_0 : i32, i32
  }
  func.func @transform_2(%arg0: i32, %arg1: i32) -> (i32, i32) {
    %c0_i32 = arith.constant 0 : i32
    %c0_i32_0 = arith.constant 0 : i32
    %c0_i32_1 = arith.constant 0 : i32
    return %c0_i32, %c0_i32_0 : i32, i32
  }
  func.func @transform_3(%arg0: i32, %arg1: i32) -> (i32, i32, i32, i32) {
    %c0_i32 = arith.constant 0 : i32
    %c0_i32_0 = arith.constant 0 : i32
    %c0_i32_1 = arith.constant 0 : i32
    return %arg0, %arg1, %c0_i32, %c0_i32_0 : i32, i32, i32, i32
  }
}

</mosaic_0001>

<bundles_post_ra>
// kernel: tpu_custom_call.1
= control target key start
LH: loop header
LB: loop body
LE: loop exit
PB: predicated region body
PF: predicated region fallthrough
CT: control target
= control target key end

     0   :  { %6 = vsyncpa [#allocation3], 0  ;;  %s340_s0 = inlined_call_operand.hbm [shape: f32[8,128], index: 0, kind: input, shape index: {}]   ;;  %s341_s1 = inlined_call_operand.hbm [shape: f32[8,128], index: 1, kind: output, shape index: {}]  }
   0x1   :  { %7 = vsyncpa [#allocation4], 0  ;;  %s261_s6 = smov 0  }
   0x2 LB: > { %s144_s7 = sadd.s32 4294967295, %s247_s6   ;;  %p145_p0 = scmp.ge.s32.totalorder %s247_s6, 1  ;;  %s247_s6 = sphi %s261_s6, %s13_s6  }
   0x3   : > { %p60_p1 = scmp.lt.s32.totalorder %s247_s6, 3  ;;  %p275_p3 = scmp.eq.s32.totalorder %s144_s7, 0 }
   0x4   : > { %s249_s10 = smov [#allocation2]   ;;  %s179_s15 = scalar_lea.hbm %s340_s0, 128 }
   0x5   : > { %p269_p2 = pnand %p145_p0, %p60_p1  ;;  %s73_s11 = sshll.u32 %s249_s10, 4  ;;  %s74_s11 = int_to_ptr.vmem [resolvable:$true] %s73_s11 }
   0x6   : > { %s346_s9 = scalar_select %p275_p3, 1, 0 }
   0x7   : > { %s345_s8 = scalar_select %p269_p2, 1, 0 }
   0x8   : > { %p161_p4 = pneg %p269_p2  ;;  %p180_p6 = scmp.ne.s32.totalorder %s340_s0, %s179_s15 }
   0x9   : > { %p186_p10 = scmp.lt.u32.totalorder %s179_s15, %s340_s0 }
   0xa   : > { %p283_p5 = pnand %p275_p3, %p161_p4 }
   0xc   : > { %p181_p7 = pneg %p283_p5 }
   0xe   : > { %p182_p8 = pnand %p181_p7, %p180_p6 }
  0x10   : > { %p183_p9 = pneg %p182_p8 }
  0x12   : > { %p188_p11 = pnand %p186_p10, %p183_p9 }
  0x14   : > { %191 = shalt.err (!%p188_p11)
}
  0x15   : > { %s192_s20 = scalar_lea.vmem %s74_s11, 128  ;;  %p200_p1 = scmp.lt.s32.totalorder %s74_s11, %s74_s11 }
  0x16   : > { %p193_p12 = scmp.ne.s32.totalorder %s74_s11, %s192_s20  ;;  %p201_p4 = scmp.lt.s32.totalorder %s192_s20, %s192_s20 }
  0x18   : > { %p195_p13 = pnand %p193_p12, %p181_p7  ;;  %p202_p3 = por %p201_p4, %p200_p1 }
  0x1a   : > { %p196_p0 = pneg %p195_p13 }
  0x1c   : > { %p203_p2 = pnand %p202_p3, %p196_p0 }
  0x1e   : > { %206 = shalt.err (!%p203_p2)
}
  0x1f   : > { %164 = dma.hbm_to_vmem [thread:$0]  (!%p283_p5), %s340_s0, 128, %s74_s11, [#allocation3]  }
  0x20   : > { %p348_p6 = scmp.ne.s32.totalorder %s345_s8, 0 }
  0x21   : > { %p349_p8 = scmp.ne.s32.totalorder (!%p348_p6), %s346_s9, 0 }
  0x22   : > { %86 = sbr.rel (%p348_p6) target bundleno = 67 (0x43), region = 24 }
  0x29   : > { %238 = dma.done.wait (%p349_p8), [#allocation3], 128  }
  0x2a   : > { %240 = vsyncadd (%p349_p8), [#allocation3], 4294967168  ;;  %s250_s23 = smov [#allocation5]   ;;  %p311_p2 = scmp.eq.s32.totalorder %s144_s7, 1  ;;  %v96_v0 = vld [vmem:[#allocation2] sm:$0xff] }
  0x2b   : > { %s105_s24 = sshll.u32 %s250_s23, 4  ;;  %97 = vst [vmem:[#allocation5] sm:$0xff] %v96_v0  ;;  %s106_s24 = int_to_ptr.vmem [resolvable:$true] %s105_s24 }
  0x2c   : > { %s207_s26 = scalar_lea.vmem %s106_s24, 128  ;;  %p214_p9 = scmp.lt.s32.totalorder %s106_s24, %s106_s24 }
  0x2d   : > { %p208_p3 = scmp.ne.s32.totalorder %s106_s24, %s207_s26  ;;  %p215_p10 = scmp.lt.s32.totalorder %s207_s26, %s207_s26 }
  0x2f   : > { %p209_p5 = pnand %p208_p3, %p311_p2  ;;  %p216_p11 = por %p215_p10, %p214_p9 }
  0x31   : > { %p210_p7 = pneg %p209_p5 }
  0x33   : > { %p217_p12 = pnand %p216_p11, %p210_p7 }
  0x35   : > { %220 = shalt.err (!%p217_p12)
}
  0x36   : > { %s221_s29 = scalar_lea.hbm %s341_s1, 128 }
  0x37   : > { %p222_p13 = scmp.ne.s32.totalorder %s341_s1, %s221_s29  ;;  %p227_p4 = scmp.lt.u32.totalorder %s221_s29, %s341_s1 }
  0x39   : > { %p223_p0 = pnand %p222_p13, %p311_p2 }
  0x3b   : > { %p224_p1 = pneg %p223_p0 }
  0x3d   : > { %p229_p6 = pnand %p227_p4, %p224_p1 }
  0x3f   : > { %232 = shalt.err (!%p229_p6)
}
  0x40   : > { %158 = dma.vmem_to_hbm [thread:$0]  (%p311_p2), %s106_s24, 128, %s341_s1, [#allocation4]  }
  0x41   : > { %242 = dma.done.wait (%p311_p2), [#allocation4], 128  }
  0x42   : > { %244 = vsyncadd (%p311_p2), [#allocation4], 4294967168 }
  0x43 PF: > { %s13_s6 = sadd.s32 1, %s247_s6  }
  0x44   : > { %p10_p8 = scmp.ge.s32.totalorder %s13_s6, 4  }
  0x46   :  { %12 = sbr.rel (!%p10_p8) target bundleno = 2 (0x2), region = 53 }
  0x4d   :  { %118 = vsyncpa [#allocation3], 1 }
  0x4e   :  { %120 = vsyncpa [#allocation3 + $0x1], 1 }
  0x4f   :  { %121 = vsyncpa [#allocation4], 1 }
  0x50   :  { %123 = vsyncpa [#allocation4 + $0x1], 1 }

// kernel: tile.8
= control target key start
LH: loop header
LB: loop body
LE: loop exit
PB: predicated region body
PF: predicated region fallthrough
CT: control target
= control target key end

     0   :  { %2 = vsyncpa [#allocation1], 0  ;;  %s44_s6 = smov [#allocation0]   ;;  %s70_s0 = inlined_call_operand.hbm [shape: f32[4], index: 0, kind: input, shape index: {}]   ;;  %s71_s1 = inlined_call_operand.vmem [shape: f32[4,4], index: 1, kind: output, shape index: {}]  }
   0x1   :  { %s9_s7 = sshll.u32 %s44_s6, 4  ;;  %s20_s10 = scalar_lea.hbm %s70_s0, 16  ;;  %s10_s7 = int_to_ptr.vmem [resolvable:$true] %s9_s7 }
   0x2   :  { %p21_p0 = scmp.ne.s32.totalorder %s70_s0, %s20_s10  ;;  %p24_p1 = scmp.lt.u32.totalorder %s20_s10, %s70_s0 }
   0x4   :  { %p26_p2 = pnand %p24_p1, %p21_p0 }
   0x6   :  { %29 = shalt.err (!%p26_p2)
}
   0x7   :  { %s30_s15 = scalar_lea.vmem %s10_s7, 16  ;;  %s34_s16 = scalar_lea.vmem %s10_s7, 32 }
   0x8   :  { %p31_p3 = scmp.ne.s32.totalorder %s10_s7, %s30_s15  ;;  %p35_p4 = scmp.lt.s32.totalorder %s10_s7, %s10_s7 }
   0x9   :  { %p36_p5 = scmp.lt.s32.totalorder %s34_s16, %s30_s15 }
   0xb   :  { %p37_p6 = por %p36_p5, %p35_p4 }
   0xd   :  { %p38_p7 = pnand %p37_p6, %p31_p3 }
   0xf   :  { %41 = shalt.err (!%p38_p7)
}
  0x10   :  { %12 = dma.hbm_to_vmem [thread:$0]  %s70_s0, 16, %s10_s7, [#allocation1]  }
  0x11   :  { %42 = dma.done.wait [#allocation1], 16  }
  0x12   :  { %43 = vsyncadd [#allocation1], 4294967280  ;;  %v16_v0 = vld [vmem:[#allocation0] ss:$0 sm:$0xff] }
  0x13   :  { %17 = vst [vmem:[%s71_s1] sm:$0xf] %v16_v0 }
  0x14   :  { %18 = vsyncpa [#allocation1], 1 }

// kernel: _transposed_upsample_impl.1
= control target key start
LH: loop header
LB: loop body
LE: loop exit
PB: predicated region body
PF: predicated region fallthrough
CT: control target
= control target key end

     0   :  { %s3477_s12 = smov 0   ;;  %s3479_s13 = smov 0   ;;  %s5363_s0 = inlined_call_operand.vmem [shape: f32[2,20,20,4], index: 0, kind: input, shape index: {}]   ;;  %s5364_s1 = inlined_call_operand.vmem [shape: f32[36,16], index: 1, kind: input, shape index: {}]   ;;  %s5365_s2 = inlined_call_operand.vmem [shape: f32[1,16], index: 2, kind: input, shape index: {}]   ;;  %s5366_s3 = inlined_call_operand.vmem [shape: f32[2,18,18,16], index: 3, kind: output, shape index: {}]  }
   0x1   :  { %s3481_s14 = smov 0   ;;  %s3483_s15 = smov 0  }
   0x2   :  { %s3485_s16 = smov 0  }
   0x3 LB: > { %s22_s17 = sadd.s32 1, %s3435_s14  ;;  %s25_s18 = sadd.s32 1, %s3439_s15  ;;  %s3443_s16 = sphi %s3485_s16, %s13_s16   ;;  %s3439_s15 = sphi %s3483_s15, %s5487_s15   ;;  %s3435_s14 = sphi %s3481_s14, %s5486_s14   ;;  %s3431_s13 = sphi %s3479_s13, %s5485_s13   ;;  %s3427_s12 = sphi %s3477_s12, %s5484_s12  }
   0x4   : > { %p23_p0 = scmp.ge.s32.totalorder %s22_s17, 2  ;;  %p3187_p1 = scmp.ge.s32.totalorder %s3443_s16, 1 }
   0x5   : > { %p151_p2 = scmp.lt.s32.totalorder %s3443_s16, 5 }
   0x6   : > { %s5489_s17 = smov (%p23_p0, %s22_s17), 0  ;;  %s5491_s18 = smov (!%p23_p0, %s25_s18), %s3439_s15 }
   0x7   : > { %p152_p3 = pnand %p3187_p1, %p151_p2  ;;  %p27_p4 = scmp.ge.s32.totalorder %s5491_s18, 2 }
   0x9   : > { %s5493_s18 = smov (%p27_p4, %s5491_s18), 0  ;;  %155 = sbr.rel (%p152_p3) target bundleno = 799 (0x31f), region = 32 }
  0x10   : > { %p180_p5 = scmp.lt.s32.totalorder %s3431_s13, 1  ;;  %s3190_s19 = smul.u32 216, %s3427_s12  ;;  %vm259_vm0 = vcmask 1046528   ;;  %vm386_vm1 = vcmask 1045504   ;;  %vm2125_vm2 = vcmask 1043456   ;;  %vm3455_vm3 = vmmov 0  }
  0x11   : > { %s3445_s25 = smov 4   ;;  %s3446_s26 = smov 8   ;;  %vm1025_vm4 = vcmask 31744   ;;  %vm1053_vm5 = vcmask 64512   ;;  %vm1081_vm6 = vcmask 97280   ;;  %vm1109_vm7 = vcmask 130048  }
  0x12   : > { %s5495_s13 = smov (!%p180_p5, %s3431_s13), 1  ;;  %s3447_s27 = smov 12   ;;  %vm1137_vm8 = vcmask 162816   ;;  %vm1165_vm9 = vcmask 195584   ;;  %vm1193_vm10 = vcmask 228352   ;;  %vm1221_vm11 = vcmask 261120  }
  0x13   : > { %s3327_s20 = smul.u32 480, %s5495_s13  ;;  %s3448_s28 = smov 20   ;;  %vm2082_vm12 = vcmask 293888   ;;  %vm3065_vm13 = vcmask 123904  }
  0x14   : > { %s3449_s29 = smov 16   ;;  %s3451_s7 = smov 24  }
  0x15   : > { %s184_s23 = scalar_lea.vmem %s5363_s0, %s3327_s20  ;;  %s3454_s22 = smov 32  }
  0x16   : > { %s3516_s24 = scalar_lea.vmem %s184_s23, %s3190_s19  ;;  %s3452_s19 = smov 28  }
  0x17   : > { %v3519_v0 = vld [vmem:[%s3516_s24 + $0x10] sm:$0xf]  ;;  %v3522_v1 = vld [vmem:[%s3516_s24] sm:$0xff]  ;;  %v3525_v2 = vld [vmem:[%s3516_s24 + $0x8] sm:$0xff] }
  0x18   : > { %v263_v3 = vrot.slane %v3519_v0, 1  ;;  %v260_v4 = vrot.slane %v3522_v1, 1  ;;  %v261_v5 = vrot.slane %v3525_v2, 1  ;;  %v3531_v6 = vld [vmem:[%s3516_s24 + $0x28] sm:$0xf]  ;;  %v3534_v7 = vld [vmem:[%s3516_s24 + $0x18] sm:$0xff] }
  0x19   : > { %v3537_v8 = vld [vmem:[%s3516_s24 + $0x20] sm:$0xff]  ;;  %v3542_v10 = vrot.slane %v3531_v6, 1  ;;  %v265_v11 = vrot.slane %v3534_v7, 1  ;;  %v3549_v14 = vld [vmem:[%s3516_s24 + $0x38] sm:$0xff]  ;;  %v3555_v16 = vld [vmem:[%s3516_s24 + $0x30] sm:$0xff] }
  0x1a   : > { %309 = vrot.lane.b32.xlu1 %v263_v3, %s3445_s25  ;;  %v262_v9 = vsel %vm259_vm0, %v260_v4, %v261_v5  ;;  %v266_v12 = vrot.slane %v3537_v8, 1  ;;  %v264_v13 = vsel %vm259_vm0, %v261_v5, %v263_v3  ;;  %v3552_v15 = vld [vmem:[%s3516_s24 + $0x40] sm:$0xf]  ;;  %v271_v18 = vrot.slane %v3549_v14, 1  ;;  %v3573_v22 = vld [vmem:[%s3516_s24 + $0x48] sm:$0xff]  ;;  %v3576_v23 = vld [vmem:[%s3516_s24 + $0x50] sm:$0xff] }
  0x1b   : > { %305 = vrot.lane.b32.xlu0 %v262_v9, %s3445_s25  ;;  %v3565_v19 = vrot.slane %v3552_v15, 1  ;;  %v270_v21 = vrot.slane %v3555_v16, 1  ;;  %v275_v25 = vrot.slane %v3573_v22, 1  ;;  %v276_v26 = vrot.slane %v3576_v23, 1  ;;  %v3592_v28 = vld [vmem:[%s3516_s24 + $0x58] sm:$0xf] }
  0x1c   : > { %v3561_v17 = vsel %vm259_vm0, %v265_v11, %v266_v12  ;;  %v3569_v20 = vsel %vm259_vm0, %v266_v12, %v3542_v10  ;;  %v3602_v30 = vrot.slane %v3592_v28, 1  ;;  %v3605_v31 = vld [vmem:[%s3516_s24 + $0x68] sm:$0xff]  ;;  %v3608_v32 = vld [vmem:[%s3516_s24 + $0x70] sm:$0xf]  ;;  %v3611_v33 = vld [vmem:[%s3516_s24 + $0x60] sm:$0xff] }
  0x1d   : > { %v3584_v24 = vsel %vm259_vm0, %v271_v18, %v3565_v19  ;;  %v3589_v27 = vsel %vm259_vm0, %v270_v21, %v271_v18  ;;  %v3599_v29 = vsel %vm259_vm0, %v275_v25, %v276_v26  ;;  %v281_v34 = vrot.slane %v3605_v31, 1  ;;  %v3627_v38 = vld [vmem:[%s3516_s24 + $0x78] sm:$0xff]  ;;  %v3630_v39 = vld [vmem:[%s3516_s24 + $0x80] sm:$0xff]  ;;  %v3646_v44 = vld [vmem:[%s3516_s24 + $0x88] sm:$0xf] }
  0x1e   : > { %315 = vrot.lane.b32.xlu1 %v3542_v10, %s3445_s25  ;;  %v3619_v35 = vrot.slane %v3608_v32, 1  ;;  %v3623_v36 = vsel %vm259_vm0, %v276_v26, %v3602_v30  ;;  %v280_v37 = vrot.slane %v3611_v33, 1  ;;  %5394 = vst [vmem:[#allocation3_spill] sm:$0xff] %v3630_v39  ;;  %v285_v41 = vrot.slane %v3627_v38, 1  ;;  %v3659_v47 = vld [vmem:[%s3516_s24 + $0x98] sm:$0xff]  ;;  %v3665_v49 = vld [vmem:[%s3516_s24 + $0x90] sm:$0xff] }
  0x1f   : > { %307 = vrot.lane.b32.xlu0 %v264_v13, %s3445_s25  ;;  %v286_v42 = vrot.slane %v3630_v39, 1  ;;  %v3656_v46 = vrot.slane %v3646_v44, 1  ;;  %v3662_v48 = vld [vmem:[%s3516_s24 + $0xa0] sm:$0xf]  ;;  %v291_v50 = vrot.slane %v3659_v47, 1  ;;  %v290_v53 = vrot.slane %v3665_v49, 1 }
  0x20   : > { %5393 = vst [vmem:[#allocation2_spill] sm:$0xff] %v3619_v35  ;;  %v3638_v40 = vsel %vm259_vm0, %v281_v34, %v3619_v35  ;;  %v3643_v43 = vsel %vm259_vm0, %v280_v37, %v281_v34  ;;  %v3673_v51 = vrot.slane %v3662_v48, 1  ;;  %v3681_v54 = vld [vmem:[%s3516_s24 + $0xa8] sm:$0xff]  ;;  %v3684_v55 = vld [vmem:[%s3516_s24 + $0xb0] sm:$0xff]  ;;  %v3700_v60 = vld [vmem:[%s3516_s24 + $0xb8] sm:$0xf] }
  0x21   : > { %v3653_v45 = vsel %vm259_vm0, %v285_v41, %v286_v42  ;;  %5396 = vst [vmem:[#allocation5_spill] sm:$0xff] %v3656_v46  ;;  %v3677_v52 = vsel %vm259_vm0, %v286_v42, %v3656_v46  ;;  %v295_v57 = vrot.slane %v3681_v54, 1  ;;  %v296_v58 = vrot.slane %v3684_v55, 1  ;;  %v3713_v63 = vld [vmem:[%s3516_s24 + $0xc8] sm:$0xff]  ;;  %v3716_v3 = vld [vmem:[%s3516_s24 + $0xd0] sm:$0xf] }
  0x22   : > { %311 = vrot.lane.b32.xlu1 %v3561_v17, %s3445_s25  ;;  %5395 = vst [vmem:[#allocation4_spill] sm:$0xff] %v3653_v45  ;;  %5397 = vst [vmem:[#allocation6_spill] sm:$0xff] %v3677_v52  ;;  %v3692_v56 = vsel %vm259_vm0, %v291_v50, %v3673_v51  ;;  %v3697_v59 = vsel %vm259_vm0, %v290_v53, %v291_v50  ;;  %v3710_v62 = vrot.slane %v3700_v60, 1  ;;  %v3719_v4 = vld [vmem:[%s3516_s24 + $0xc0] sm:$0xff]  ;;  %v301_v5 = vrot.slane %v3713_v63, 1 }
  0x23   : > { %313 = vrot.lane.b32.xlu0 %v3569_v20, %s3445_s25  ;;  %5398 = vst [vmem:[#allocation7_spill] sm:$0xff] %v3692_v56  ;;  %5399 = vst [vmem:[#allocation8_spill] sm:$0xff] %v3697_v59  ;;  %v3707_v61 = vsel %vm259_vm0, %v295_v57, %v296_v58  ;;  %v3727_v9 = vrot.slane %v3716_v3, 1  ;;  %v300_v12 = vrot.slane %v3719_v4, 1  ;;  %v387_v18 = vrot.slane %v3522_v1, 2 }
  0x24   : > { %v3731_v11 = vsel %vm259_vm0, %v296_v58, %v3710_v62  ;;  %v388_v21 = vrot.slane %v3525_v2, 2  ;;  %v390_v34 = vrot.slane %v3519_v0, 2  ;;  %v393_v37 = vrot.slane %v3537_v8, 2 }
  0x25   : > { %5400 = vst [vmem:[#allocation9_spill] sm:$0xff] %v3727_v9  ;;  %v3740_v13 = vsel %vm259_vm0, %v301_v5, %v3727_v9  ;;  %v3745_v25 = vsel %vm259_vm0, %v300_v12, %v301_v5  ;;  %v3758_v41 = vrot.slane %v3531_v6, 2  ;;  %v392_v50 = vrot.slane %v3534_v7, 2 }
  0x26   : > { %319 = vrot.lane.b32.xlu1 %v3584_v24, %s3445_s25  ;;  %v389_v26 = vsel %vm386_vm1, %v387_v18, %v388_v21  ;;  %v391_v42 = vsel %vm386_vm1, %v388_v21, %v390_v34  ;;  %v397_v57 = vrot.slane %v3555_v16, 2  ;;  %v398_v58 = vrot.slane %v3549_v14, 2 }
  0x27   : > { %317 = vrot.lane.b32.xlu0 %v3589_v27, %s3445_s25  ;;  %v3766_v53 = vsel %vm386_vm1, %v393_v37, %v3758_v41  ;;  %v394_v5 = vsel %vm386_vm1, %v392_v50, %v393_v37  ;;  %v3778_v18 = vrot.slane %v3552_v15, 2  ;;  %v403_v21 = vrot.slane %v3576_v23, 2 }
  0x28   : > { %v3775_v12 = vsel %vm386_vm1, %v397_v57, %v398_v58  ;;  %v402_v37 = vrot.slane %v3573_v22, 2  ;;  %v407_v50 = vrot.slane %v3611_v33, 2  ;;  %v408_v57 = vrot.slane %v3605_v31, 2 }
  0x2a   : > { %323 = vrot.lane.b32.xlu1 %v3599_v29, %s3445_s25 }
  0x2b   : > { %321 = vrot.lane.b32.xlu0 %v3565_v19, %s3445_s25 }
  0x2e   : > { %327 = vrot.lane.b32.xlu1 %v3602_v30, %s3445_s25 }
  0x2f   : > { %325 = vrot.lane.b32.xlu0 %v3623_v36, %s3445_s25 }
  0x32   : > { %331 = vrot.lane.b32.xlu1 %v3638_v40, %s3445_s25 }
  0x33   : > { %329 = vrot.lane.b32.xlu0 %v3643_v43, %s3445_s25 }
  0x36   : > { %335 = vrot.lane.b32.xlu1 %v3653_v45, %s3445_s25 }
  0x37   : > { %333 = vrot.lane.b32.xlu0 %v3619_v35, %s3445_s25 }
  0x3a   : > { %339 = vrot.lane.b32.xlu1 %v3656_v46, %s3445_s25 }
  0x3b   : > { %337 = vrot.lane.b32.xlu0 %v3677_v52, %s3445_s25  ;;  %v3804_v52 = vsel %vm386_vm1, %v402_v37, %v403_v21  ;;  %v3822_v37 = vrot.slane %v3646_v44, 2 }
  0x3d   : > { %5402 = vst [vmem:[#allocation11_spill] sm:$0xff] %v3822_v37 }
  0x3e   : > { %343 = vrot.lane.b32.xlu1 %v3692_v56, %s3445_s25 }
  0x3f   : > { %341 = vrot.lane.b32.xlu0 %v3697_v59, %s3445_s25 }
  0x42   : > { %347 = vrot.lane.b32.xlu1 %v3707_v61, %s3445_s25 }
  0x43   : > { %345 = vrot.lane.b32.xlu0 %v3673_v51, %s3445_s25 }
  0x46   : > { %351 = vrot.lane.b32.xlu1 %v3710_v62, %s3445_s25 }
  0x47   : > { %349 = vrot.lane.b32.xlu0 %v3731_v11, %s3445_s25 }
  0x4a   : > { %355 = vrot.lane.b32.xlu1 %v3740_v13, %s3445_s25 }
  0x4b   : > { %353 = vrot.lane.b32.xlu0 %v3745_v25, %s3445_s25 }
  0x4e   : > { %432 = vrot.lane.b32.xlu1 %v389_v26, %s3446_s26  ;;  %v3786_v26 = vrot.slane %v3592_v28, 2 }
  0x4f   : > { %357 = vrot.lane.b32.xlu0 %v3727_v9, %s3445_s25  ;;  %v3814_v9 = vrot.slane %v3608_v32, 2 }
  0x51   : > { %5401 = vst [vmem:[#allocation10_spill] sm:$0xff] %v3814_v9  ;;  %v3826_v35 = vsel %vm386_vm1, %v408_v57, %v3814_v9 }
  0x52   : > { %436 = vrot.lane.b32.xlu1 %v390_v34, %s3446_s26  ;;  %v3790_v34 = vsel %vm386_vm1, %v398_v58, %v3778_v18  ;;  %v3811_v58 = vsel %vm386_vm1, %v407_v50, %v408_v57  ;;  %5403 = vst [vmem:[#allocation12_spill] sm:$0xff] %v3826_v35  ;;  %v412_v50 = vrot.slane %v3627_v38, 2  ;;  %v1249_v57 = vld [vmem:[%s5364_s1] sm:$0xff] }
  0x53   : > { %434 = vrot.lane.b32.xlu0 %v391_v42, %s3446_s26  ;;  %v3799_v42 = vsel %vm386_vm1, %v403_v21, %v3786_v26  ;;  %v413_v21 = vrot.slane %v3630_v39, 2 }
  0x55   : > { %v3835_v45 = vsel %vm386_vm1, %v413_v21, %v3822_v37  ;;  %v3838_v39 = vsel %vm386_vm1, %v412_v50, %v413_v21  ;;  %v1250_v21 = vld [vmem:[%s5364_s1 + $0x8] sm:$0xff] }
  0x56   : > { %440 = vrot.lane.b32.xlu1 %v3766_v53, %s3446_s26  ;;  %5404 = vst [vmem:[#allocation13_spill] sm:$0xff] %v3835_v45  ;;  %v3316_v50 = vpack.c.bf16 %v1250_v21, %v1249_v57  ;;  %v5380_v21 = vmov 0.0  }
  0x57   : > { %438 = vrot.lane.b32.xlu0 %v394_v5, %s3446_s26  ;;  %3252 = vmatprep.mubr.msk.f32.mxu0 %vm3455_vm3, %v5380_v21 }
  0x58   : > { %3285 = vmatprep.mubr.msk.f32.mxu1 %vm3455_vm3, %v5380_v21 }
  0x5a   : > { %444 = vrot.lane.b32.xlu1 %v3775_v12, %s3446_s26 }
  0x5b   : > { %442 = vrot.lane.b32.xlu0 %v3758_v41, %s3446_s26 }
  0x5e   : > { %448 = vrot.lane.b32.xlu1 %v3778_v18, %s3446_s26 }
  0x5f   : > { %446 = vrot.lane.b32.xlu0 %v3790_v34, %s3446_s26 }
  0x62   : > { %452 = vrot.lane.b32.xlu1 %v3799_v42, %s3446_s26 }
  0x63   : > { %450 = vrot.lane.b32.xlu0 %v3804_v52, %s3446_s26 }
  0x66   : > { %456 = vrot.lane.b32.xlu1 %v3811_v58, %s3446_s26 }
  0x67   : > { %454 = vrot.lane.b32.xlu0 %v3786_v26, %s3446_s26 }
  0x6a   : > { %460 = vrot.lane.b32.xlu1 %v3814_v9, %s3446_s26  ;;  %v1253_v9 = vld [vmem:[%s5364_s1 + $0x20] sm:$0xf] }
  0x6b   : > { %458 = vrot.lane.b32.xlu0 %v3826_v35, %s3446_s26 }
  0x6e   : > { %464 = vrot.lane.b32.xlu1 %v3835_v45, %s3446_s26  ;;  %v3450_v45 = vmov 0.0|0.0  }
  0x6f   : > { %462 = vrot.lane.b32.xlu0 %v3838_v39, %s3446_s26  ;;  %3315 = vmatprep.subr.bf16.mxu0 %v3450_v45 }
  0x70   : > { %3321 = vmatprep.subr.bf16.mxu1 %v3450_v45  ;;  %3317 = vmatpush3.bf16.msra.mxu0 %v3316_v50 }
  0x71   : > { %3318 = vmatprep.subr.bf16.mxu0 %v3450_v45  ;;  %3324 = vmatpush3.bf16.msra.mxu1 %v3316_v50  ;;  %v417_v50 = vrot.slane %v3665_v49, 2 }
  0x72   : > { %516 = vrot.lane.b32.xlu1 %v3534_v7, %s3447_s27  ;;  %3322 = vmatprep.subr.bf16.mxu1 %v3450_v45 }
  0x73   : > { %466 = vrot.lane.b32.xlu0 %v3822_v37, %s3446_s26 }
  0x76   : > { %688 = vrot.lane.b32.xlu1 %v394_v5, %s3448_s28  ;;  %v1252_v5 = vld [vmem:[%s5364_s1 + $0x18] sm:$0xff] }
  0x77   : > { %602 = vrot.lane.b32.xlu0 %v3561_v17, %s3449_s29  ;;  %v1251_v17 = vld [vmem:[%s5364_s1 + $0x10] sm:$0xff] }
  0x78   : > { %v3319_v57 = vpack.c.bf16 %v1252_v5, %v1251_v17  ;;  %v418_v17 = vrot.slane %v3659_v47, 2 }
  0x7a   : > { %518 = vrot.lane.b32.xlu1 %v3537_v8, %s3447_s27  ;;  %3320 = vmatpush3.bf16.msra.mxu0 %v3319_v57 }
  0x7b   : > { %772 = vrot.lane.b32.xlu0 %v3555_v16, %s3451_s7  ;;  %3325 = vmatpush3.bf16.msra.mxu1 %v3319_v57 }
  0x7c   : > { %3250 = vmatprep.subr.mxu0 %v5380_v21  ;;  %3323 = vmatprep.subr.mxu1 %v5380_v21 }
  0x7e   : > { %604 = vrot.lane.b32.xlu1 %v3569_v20, %s3449_s29  ;;  %3251 = vmatpush3.msk.msra.mxu0 %vm2125_vm2, %v1253_v9 }
  0x7f   : > { %858 = vrot.lane.b32.xlu0 %v3589_v27, %s3452_s19  ;;  %3326 = vmatpush3.msk.msra.mxu1 %vm2125_vm2, %v1253_v9 }
  0x82   : > { %690 = vrot.lane.b32.xlu1 %v3766_v53, %s3448_s28 }
  0x83   : > { %944 = vrot.lane.b32.xlu0 %v3775_v12, %s3454_s22 }
  0x86   : > { %860 = vrot.lane.b32.xlu1 %v3584_v24, %s3452_s19 }
  0x87   : > { %774 = vrot.lane.b32.xlu0 %v3549_v14, %s3451_s7 }
  0x8a   : > { %522 = vrot.lane.b32.xlu1 %v3555_v16, %s3447_s27 }
  0x8b   : > { %946 = vrot.lane.b32.xlu0 %v3790_v34, %s3454_s22 }
  0x8c   : > { %v3892_v20 = vpop.permute.xlu1 %309 }
  0x8d   : > { %v3894_v45 = vpop.permute.xlu0 %305 }
  0x8e   : > { %608 = vrot.lane.b32.xlu1 %v3589_v27, %s3449_s29 }
  0x8f   : > { %546 = vrot.lane.b32.xlu0 %v3665_v49, %s3447_s27 }
  0x90   : > { %v3900_v9 = vpop.permute.xlu1 %315 }
  0x91   : > { %5405 = vst [vmem:[#allocation14_spill] sm:$0xff] %v3900_v9  ;;  %v3902_v53 = vpop.permute.xlu0 %307 }
  0x92   : > { %520 = vrot.lane.b32.xlu1 %v3531_v6, %s3447_s27  ;;  %v3921_v6 = vsel %vm386_vm1, %v417_v50, %v418_v17 }
  0x93   : > { %632 = vrot.lane.b32.xlu0 %v3697_v59, %s3449_s29  ;;  %5407 = vst [vmem:[#allocation16_spill] sm:$0xff] %v3921_v6 }
  0x94   : > { %v3908_v16 = vpop.permute.xlu1 %311 }
  0x95   : > { %v3912_v27 = vpop.permute.xlu0 %313 }
  0x96   : > { %694 = vrot.lane.b32.xlu1 %v3775_v12, %s3448_s28 }
  0x97   : > { %544 = vrot.lane.b32.xlu0 %v3646_v44, %s3447_s27 }
  0x98   : > { %v3918_v5 = vpop.permute.xlu1 %319 }
  0x99   : > { %5406 = vst [vmem:[#allocation15_spill] sm:$0xff] %v3918_v5  ;;  %v3923_v57 = vpop.permute.xlu0 %317 }
  0x9a   : > { %5408 = vst [vmem:[#allocation17_spill] sm:$0xff] %v3923_v57  ;;  %606 = vrot.lane.b32.xlu1 %v3542_v10, %s3449_s29 }
  0x9b   : > { %718 = vrot.lane.b32.xlu0 %v3921_v6, %s3448_s28 }
  0x9c   : > { %v3929_v49 = vpop.permute.xlu1 %323 }
  0x9d   : > { %5409 = vst [vmem:[#allocation18_spill] sm:$0xff] %v3929_v49  ;;  %v3931_v21 = vpop.permute.xlu0 %321  ;;  %v423_v49 = vrot.slane %v3684_v55, 2 }
  0x9e   : > { %5410 = vst [vmem:[#allocation19_spill] sm:$0xff] %v3931_v21  ;;  %778 = vrot.lane.b32.xlu1 %v3573_v22, %s3451_s7 }
  0x9f   : > { %630 = vrot.lane.b32.xlu0 %v3656_v46, %s3449_s29 }
  0xa0   : > { %v3937_v44 = vpop.permute.xlu1 %327 }
  0xa1   : > { %5411 = vst [vmem:[#allocation20_spill] sm:$0xff] %v3937_v44  ;;  %v3939_v12 = vpop.permute.xlu0 %325 }
  0xa2   : > { %5412 = vst [vmem:[#allocation21_spill] sm:$0xff] %v3939_v12  ;;  %524 = vrot.lane.b32.xlu1 %v3549_v14, %s3447_s27  ;;  %v422_v12 = vrot.slane %v3681_v54, 2 }
  0xa3   : > { %802 = vrot.lane.b32.xlu0 %v3681_v54, %s3451_s7 }
  0xa4   : > { %v3945_v10 = vpop.permute.xlu1 %331  ;;  %v3990_v59 = vsel %vm386_vm1, %v422_v12, %v423_v49 }
  0xa5   : > { %5413 = vst [vmem:[#allocation22_spill] sm:$0xff] %v3945_v10  ;;  %v3947_v50 = vpop.permute.xlu0 %329 }
  0xa6   : > { %5414 = vst [vmem:[#allocation23_spill] sm:$0xff] %v3947_v50  ;;  %692 = vrot.lane.b32.xlu1 %v3758_v41, %s3448_s28 }
  0xa7   : > { %548 = vrot.lane.b32.xlu0 %v3659_v47, %s3447_s27 }
  0xa8   : > { %v3953_v21 = vpop.permute.xlu1 %335 }
  0xa9   : > { %v3955_v44 = vpop.permute.xlu0 %333 }
  0xaa   : > { %864 = vrot.lane.b32.xlu1 %v3599_v29, %s3452_s19 }
  0xab   : > { %716 = vrot.lane.b32.xlu0 %v3822_v37, %s3448_s28 }
  0xac   : > { %v3961_v14 = vpop.permute.xlu1 %339 }
  0xad   : > { %5415 = vst [vmem:[#allocation24_spill] sm:$0xff] %v3961_v14  ;;  %v3963_v10 = vpop.permute.xlu0 %337  ;;  %v4052_v14 = vrot.slane %v3700_v60, 2 }
  0xae   : > { %610 = vrot.lane.b32.xlu1 %v3584_v24, %s3449_s29 }
  0xaf   : > { %888 = vrot.lane.b32.xlu0 %v3707_v61, %s3452_s19 }
  0xb0   : > { %v3969_v47 = vpop.permute.xlu1 %343 }
  0xb1   : > { %5416 = vst [vmem:[#allocation25_spill] sm:$0xff] %v3969_v47  ;;  %v3971_v41 = vpop.permute.xlu0 %341 }
  0xb2   : > { %5417 = vst [vmem:[#allocation26_spill] sm:$0xff] %v3971_v41  ;;  %776 = vrot.lane.b32.xlu1 %v3552_v15, %s3451_s7 }
  0xb3   : > { %634 = vrot.lane.b32.xlu0 %v3692_v56, %s3449_s29  ;;  %v3993_v56 = vrot.slane %v3662_v48, 2 }
  0xb4   : > { %v3977_v50 = vpop.permute.xlu1 %347 }
  0xb5   : > { %5418 = vst [vmem:[#allocation27_spill] sm:$0xff] %v3977_v50  ;;  %v3981_v24 = vpop.permute.xlu0 %345  ;;  %v4005_v46 = vsel %vm386_vm1, %v418_v17, %v3993_v56 }
  0xb6   : > { %5419 = vst [vmem:[#allocation28_spill] sm:$0xff] %v3981_v24  ;;  %950 = vrot.lane.b32.xlu1 %v3804_v52, %s3454_s22  ;;  %5423 = vst [vmem:[#allocation32_spill] sm:$0xff] %v4005_v46 }
  0xb7   : > { %800 = vrot.lane.b32.xlu0 %v3662_v48, %s3451_s7 }
  0xb8   : > { %v3987_v37 = vpop.permute.xlu1 %351 }
  0xb9   : > { %5420 = vst [vmem:[#allocation29_spill] sm:$0xff] %v3987_v37  ;;  %v3995_v50 = vpop.permute.xlu0 %349 }
  0xba   : > { %5421 = vst [vmem:[#allocation30_spill] sm:$0xff] %v3995_v50  ;;  %696 = vrot.lane.b32.xlu1 %v3790_v34, %s3448_s28 }
  0xbb   : > { %974 = vrot.lane.b32.xlu0 %v3990_v59, %s3454_s22 }
  0xbc   : > { %v4001_v24 = vpop.permute.xlu1 %355 }
  0xbd   : > { %5422 = vst [vmem:[#allocation31_spill] sm:$0xff] %v4001_v24  ;;  %v4007_v37 = vpop.permute.xlu0 %353 }
  0xbe   : > { %5424 = vst [vmem:[#allocation33_spill] sm:$0xff] %v4007_v37  ;;  %862 = vrot.lane.b32.xlu1 %v3565_v19, %s3452_s19 }
  0xbf   : > { %720 = vrot.lane.b32.xlu0 %v4005_v46, %s3448_s28 }
  0xc0   : > { %v433_v12 = vpop.permute.xlu1 %432 }
  0xc1   : > { %v4013_v50 = vpop.permute.xlu0 %357 }
  0xc2   : > { %5425 = vst [vmem:[#allocation34_spill] sm:$0xff] %v4013_v50  ;;  %468 = vrot.lane.b32.xlu1 %v3921_v6, %s3446_s26 }
  0xc3   : > { %886 = vrot.lane.b32.xlu0 %v3673_v51, %s3452_s19 }
  0xc4   : > { %v4019_v34 = vpop.permute.xlu1 %436 }
  0xc5   : > { %v4021_v17 = vpop.permute.xlu0 %434 }
  0xc6   : > { %804 = vrot.lane.b32.xlu1 %v3684_v55, %s3451_s7 }
  0xc7   : > { %780 = vrot.lane.b32.xlu0 %v3576_v23, %s3451_s7 }
  0xc8   : > { %v4027_v24 = vpop.permute.xlu1 %440 }
  0xc9   : > { %v4029_v37 = vpop.permute.xlu0 %438 }
  0xca   : > { %972 = vrot.lane.b32.xlu1 %v3993_v56, %s3454_s22 }
  0xcb   : > { %948 = vrot.lane.b32.xlu0 %v3778_v18, %s3454_s22 }
  0xcc   : > { %v4035_v50 = vpop.permute.xlu1 %444 }
  0xcd   : > { %5426 = vst [vmem:[#allocation35_spill] sm:$0xff] %v4035_v50  ;;  %v4037_v6 = vpop.permute.xlu0 %442 }
  0xce   : > { %5427 = vst [vmem:[#allocation36_spill] sm:$0xff] %v4037_v6  ;;  %552 = vrot.lane.b32.xlu1 %v3681_v54, %s3447_s27 }
  0xcf   : > { %528 = vrot.lane.b32.xlu0 %v3573_v22, %s3447_s27  ;;  %v4064_v22 = vsel %vm386_vm1, %v423_v49, %v4052_v14 }
  0xd0   : > { %v4043_v47 = vpop.permute.xlu1 %448 }
  0xd1   : > { %5428 = vst [vmem:[#allocation37_spill] sm:$0xff] %v4043_v47  ;;  %v4045_v5 = vpop.permute.xlu0 %446 }
  0xd2   : > { %5429 = vst [vmem:[#allocation38_spill] sm:$0xff] %v4045_v5  ;;  %890 = vrot.lane.b32.xlu1 %v3731_v11, %s3452_s19 }
  0xd3   : > { %866 = vrot.lane.b32.xlu0 %v3623_v36, %s3452_s19 }
  0xd4   : > { %v4054_v6 = vpop.permute.xlu1 %452 }
  0xd5   : > { %5430 = vst [vmem:[#allocation39_spill] sm:$0xff] %v4054_v6  ;;  %v4056_v9 = vpop.permute.xlu0 %450 }
  0xd6   : > { %5431 = vst [vmem:[#allocation40_spill] sm:$0xff] %v4056_v9  ;;  %638 = vrot.lane.b32.xlu1 %v3707_v61, %s3449_s29  ;;  %v1291_v9 = vlaneseq }
  0xd7   : > { %614 = vrot.lane.b32.xlu0 %v3599_v29, %s3449_s29 }
  0xd8   : > { %v4066_v54 = vpop.permute.xlu1 %456 }
  0xd9   : > { %5432 = vst [vmem:[#allocation41_spill] sm:$0xff] %v4066_v54  ;;  %v4068_v47 = vpop.permute.xlu0 %454 }
  0xda   : > { %5433 = vst [vmem:[#allocation42_spill] sm:$0xff] %v4068_v47  ;;  %976 = vrot.lane.b32.xlu1 %v4064_v22, %s3454_s22 }
  0xdb   : > { %952 = vrot.lane.b32.xlu0 %v3799_v42, %s3454_s22 }
  0xdc   : > { %v4074_v6 = vpop.permute.xlu1 %460 }
  0xdd   : > { %v4076_v61 = vpop.permute.xlu0 %458 }
  0xde   : > { %5434 = vst [vmem:[#allocation43_spill] sm:$0xff] %v4076_v61  ;;  %550 = vrot.lane.b32.xlu1 %v3662_v48, %s3447_s27 }
  0xdf   : > { %526 = vrot.lane.b32.xlu0 %v3552_v15, %s3447_s27 }
  0xe0   : > { %v4082_v29 = vpop.permute.xlu1 %464 }
  0xe1   : > { %v4084_v49 = vpop.permute.xlu0 %462 }
  0xe2   : > { %724 = vrot.lane.b32.xlu1 %v3990_v59, %s3448_s28 }
  0xe3   : > { %700 = vrot.lane.b32.xlu0 %v3804_v52, %s3448_s28  ;;  %v3456_v52 = vmov 1983009808  }
  0xe4   : > { %v517_v54 = vpop.permute.xlu1 %516  ;;  %v1289_v61 = vunpack.c.l.s4 %v3456_v52  ;;  %v1292_v52 = vshrl.u32 %v1291_v9, 7 }
  0xe5   : > { %v4090_v47 = vpop.permute.xlu0 %466 }
  0xe6   : > { %5435 = vst [vmem:[#allocation44_spill] sm:$0xff] %v4090_v47  ;;  %612 = vrot.lane.b32.xlu1 %v3565_v19, %s3449_s29  ;;  %v1026_v19 = vsel %vm1025_vm4, %v3522_v1, %v3894_v45 }
  0xe7   : > { %470 = vrot.lane.b32.xlu0 %v4005_v46, %s3446_s26  ;;  %v1054_v47 = vsel %vm1053_vm5, %v1026_v19, %v433_v12 }
  0xe8   : > { %v689_v15 = vpop.permute.xlu1 %688  ;;  %v1082_v41 = vsel %vm1081_vm6, %v1054_v47, %v517_v54 }
  0xe9   : > { %v603_v48 = vpop.permute.xlu0 %602 }
  0xea   : > { %784 = vrot.lane.b32.xlu1 %v3611_v33, %s3451_s7  ;;  %v1110_v50 = vsel %vm1109_vm7, %v1082_v41, %v603_v48  ;;  %v1027_v41 = vsel %vm1025_vm4, %v3525_v2, %v3902_v53 }
  0xeb   : > { %636 = vrot.lane.b32.xlu0 %v3673_v51, %s3449_s29  ;;  %v1290_v51 = vunpack.c.0.s8 %v1289_v61  ;;  %v1138_v45 = vsel %vm1137_vm8, %v1110_v50, %v689_v15 }
  0xec   : > { %v519_v5 = vpop.permute.xlu1 %518 }
  0xed   : > { %v773_v46 = vpop.permute.xlu0 %772 }
  0xee   : > { %530 = vrot.lane.b32.xlu1 %v3576_v23, %s3447_s27  ;;  %v4115_v23 = vsub.s32 %v1290_v51, %v1292_v52  ;;  %v1166_v9 = vsel %vm1165_vm9, %v1138_v45, %v773_v46 }
  0xef   : > { %808 = vrot.lane.b32.xlu0 %v3719_v4, %s3451_s7 }
  0xf0   : > { %v605_v57 = vpop.permute.xlu1 %604 }
  0xf1   : > { %v859_v1 = vpop.permute.xlu0 %858 }
  0xf2   : > { %698 = vrot.lane.b32.xlu1 %v3778_v18, %s3448_s28  ;;  %v1194_v12 = vsel %vm1193_vm10, %v1166_v9, %v859_v1  ;;  %v1055_v18 = vsel %vm1053_vm5, %v1027_v41, %v4021_v17 }
  0xf3   : > { %554 = vrot.lane.b32.xlu0 %v3684_v55, %s3447_s27  ;;  %v1083_v55 = vsel %vm1081_vm6, %v1055_v18, %v519_v5 }
  0xf4   : > { %v691_v47 = vpop.permute.xlu1 %690  ;;  %v1111_v2 = vsel %vm1109_vm7, %v1083_v55, %v605_v57  ;;  %v428_v55 = vrot.slane %v3713_v63, 2 }
  0xf5   : > { %v945_v54 = vpop.permute.xlu0 %944  ;;  %v1139_v15 = vsel %vm1137_vm8, %v1111_v2, %v691_v47 }
  0xf6   : > { %v1222_v50 = vsel %vm1221_vm11, %v1194_v12, %v945_v54  ;;  %870 = vrot.lane.b32.xlu1 %v3643_v43, %s3452_s19 }
  0xf7   : > { %v1287_v61 = vcombine.high %v1222_v50, %v1222_v50  ;;  %v1294_v46 = vrot.slane %v1222_v50, %v4115_v23  ;;  %722 = vrot.lane.b32.xlu0 %v3993_v56, %s3448_s28  ;;  %v427_v50 = vrot.slane %v3719_v4, 2 }
  0xf8   : > { %v861_v53 = vpop.permute.xlu1 %860 }
  0xf9   : > { %v1301_v17 = vrot.slane %v1287_v61, %v4115_v23  ;;  %v1302_v48 = vcombine.high %v1294_v46, %v1294_v46  ;;  %v775_v19 = vpop.permute.xlu0 %774 }
  0xfa   : > { %v1167_v51 = vsel %vm1165_vm9, %v1139_v15, %v775_v19  ;;  %616 = vrot.lane.b32.xlu1 %v3623_v36, %s3449_s29  ;;  %v5436_v19 = vmov 0.0  }
  0xfb   : > { %v1303_v5 = vcombine.high %v1301_v17, %v1301_v17  ;;  %v1673_v52 = vcombine.low %v1294_v46, %v1302_v48  ;;  %894 = vrot.lane.b32.xlu0 %v3745_v25, %s3452_s19  ;;  %v1195_v45 = vsel %vm1193_vm10, %v1167_v51, %v861_v53  ;;  %v4165_v48 = vsel %vm386_vm1, %v427_v50, %v428_v55 }
  0xfc   : > { %v4139_v1 = vpop.permute.xlu1 %522 }
  0xfd   : > { %v1674_v57 = vcombine.low %v1301_v17, %v1303_v5  ;;  %v947_v9 = vpop.permute.xlu0 %946  ;;  %v1681_v41 = vrot.slane %v1673_v52, %v4115_v23 }
  0xfe   : > { %v1223_v47 = vsel %vm1221_vm11, %v1195_v45, %v947_v9  ;;  %782 = vrot.lane.b32.xlu1 %v3592_v28, %s3451_s7 }
  0xff   : > { %v1688_v36 = vrot.slane %v1674_v57, %v4115_v23  ;;  %v1304_v12 = vcombine.high %v1223_v47, %v1223_v47  ;;  %v1311_v54 = vrot.slane %v1223_v47, %v4115_v23  ;;  %640 = vrot.lane.b32.xlu0 %v3731_v11, %s3449_s29 }
 0x100   : > { %v4150_v18 = vpop.permute.xlu1 %608 }
 0x101   : > { %v1318_v61 = vrot.slane %v1304_v12, %v4115_v23  ;;  %v1319_v46 = vcombine.high %v1311_v54, %v1311_v54  ;;  %v4155_v2 = vpop.permute.xlu0 %546  ;;  %v1689_v53 = vcombine.low %v1681_v41, %v1688_v36 }
 0x102   : > { %956 = vrot.lane.b32.xlu1 %v3811_v58, %s3454_s22 }
 0x103   : > { %v1320_v15 = vcombine.high %v1318_v61, %v1318_v61  ;;  %v1690_v17 = vcombine.low %v1311_v54, %v1319_v46  ;;  %806 = vrot.lane.b32.xlu0 %v3700_v60, %s3451_s7  ;;  %3253 = vmatmul.mubr.msk.f32.vlgmr.msra.gmra.mrb[0].mxu0 %vm2082_vm12, %v1689_v53 }
 0x104   : > { %v4162_v11 = vpop.permute.xlu1 %520  ;;  %3255 = vmatprep.mubr.msk.f32.mxu0 %vm3455_vm3, %v5436_v19 }
 0x105   : > { %v1691_v51 = vcombine.low %v1318_v61, %v1320_v15  ;;  %v633_v5 = vpop.permute.xlu0 %632  ;;  %v1698_v52 = vrot.slane %v1690_v17, %v4115_v23  ;;  %v4211_v15 = vrot.slane %v3716_v3, 2 }
 0x106   : > { %702 = vrot.lane.b32.xlu1 %v3799_v42, %s3448_s28 }
 0x107   : > { %v1705_v57 = vrot.slane %v1691_v51, %v4115_v23  ;;  %980 = vrot.lane.b32.xlu0 %v4165_v48, %s3454_s22  ;;  %5437 = vst [vmem:[#allocation45_spill] sm:$0xff] %v4211_v15 }
 0x108   : > { %v695_v45 = vpop.permute.xlu1 %694 }
 0x109   : > { %v4175_v9 = vpop.permute.xlu0 %544  ;;  %v1706_v47 = vcombine.low %v1698_v52, %v1705_v57  ;;  %v4221_v52 = vsel %vm386_vm1, %v428_v55, %v4211_v15 }
 0x10a   : > { %868 = vrot.lane.b32.xlu1 %v3602_v30, %s3452_s19  ;;  %5438 = vst [vmem:[#allocation46_spill] sm:$0xff] %v4221_v52 }
 0x10b   : > { %726 = vrot.lane.b32.xlu0 %v4064_v22, %s3448_s28  ;;  %3256 = vmatmul.mubr.msk.f32.gmra.mrb[2].mxu0 %vm2082_vm12, %v1706_v47 }
 0x10c   : > { %v4182_v42 = vpop.permute.xlu1 %606  ;;  %3258 = vmatprep.mubr.msk.f32.mxu0 %vm3455_vm3, %v5436_v19 }
 0x10d   : > { %v719_v41 = vpop.permute.xlu0 %718 }
 0x10e   : > { %786 = vrot.lane.b32.xlu1 %v3605_v31, %s3451_s7 }
 0x10f   : > { %892 = vrot.lane.b32.xlu0 %v3710_v62, %s3452_s19 }
 0x110   : > { %v779_v36 = vpop.permute.xlu1 %778 }
 0x111   : > { %v4190_v12 = vpop.permute.xlu0 %630 }
 0x112   : > { %954 = vrot.lane.b32.xlu1 %v3786_v26, %s3454_s22 }
 0x113   : > { %810 = vrot.lane.b32.xlu0 %v3713_v63, %s3451_s7 }
 0x114   : > { %v4196_v54 = vpop.permute.xlu1 %524 }
 0x115   : > { %v803_v50 = vpop.permute.xlu0 %802 }
 0x116   : > { %872 = vrot.lane.b32.xlu1 %v3638_v40, %s3452_s19 }
 0x117   : > { %978 = vrot.lane.b32.xlu0 %v4052_v14, %s3454_s22 }
 0x118   : > { %v4202_v61 = vpop.permute.xlu1 %692 }
 0x119   : > { %v4204_v46 = vpop.permute.xlu0 %548 }
 0x11a   : > { %472 = vrot.lane.b32.xlu1 %v3993_v56, %s3446_s26 }
 0x11b   : > { %896 = vrot.lane.b32.xlu0 %v3740_v13, %s3452_s19 }
 0x11c   : > { %v865_v53 = vpop.permute.xlu1 %864 }
 0x11d   : > { %v717_v17 = vpop.permute.xlu0 %716 }
 0x11e   : > { %958 = vrot.lane.b32.xlu1 %v3826_v35, %s3454_s22 }
 0x11f   : > { %474 = vrot.lane.b32.xlu0 %v3990_v59, %s3446_s26 }
 0x120   : > { %v4217_v51 = vpop.permute.xlu1 %610 }
 0x121   : > { %v889_v56 = vpop.permute.xlu0 %888 }
 0x122   : > { %532 = vrot.lane.b32.xlu1 %v3592_v28, %s3447_s27  ;;  %v1041_v28 = vsel %vm1025_vm4, %v3627_v38, %v3953_v21 }
 0x123   : > { %982 = vrot.lane.b32.xlu0 %v4221_v52, %s3454_s22 }
 0x124   : > { %v777_v57 = vpop.permute.xlu1 %776 }
 0x125   : > { %v4227_v47 = vpop.permute.xlu0 %634 }
 0x126   : > { %556 = vrot.lane.b32.xlu1 %v3700_v60, %s3447_s27  ;;  %v1029_v60 = vsel %vm1025_vm4, %v3534_v7, %v3908_v16 }
 0x127   : > { %534 = vrot.lane.b32.xlu0 %v3611_v33, %s3447_s27  ;;  %v1069_v33 = vsel %vm1053_vm5, %v1041_v28, %v4084_v49 }
 0x128   : > { %v951_v59 = vpop.permute.xlu1 %950 }
 0x129   : > { %v801_v35 = vpop.permute.xlu0 %800 }
 0x12a   : > { %618 = vrot.lane.b32.xlu1 %v3602_v30, %s3449_s29  ;;  %v1057_v30 = vsel %vm1053_vm5, %v1029_v60, %v4029_v37 }
 0x12b   : > { %558 = vrot.lane.b32.xlu0 %v3719_v4, %s3447_s27  ;;  %v1097_v4 = vsel %vm1081_vm6, %v1069_v33, %v4155_v2  ;;  %v1085_v21 = vsel %vm1081_vm6, %v1057_v30, %v4139_v1 }
 0x12c   : > { %v4240_v55 = vpop.permute.xlu1 %696  ;;  %v1125_v15 = vsel %vm1109_vm7, %v1097_v4, %v633_v5  ;;  %v1113_v7 = vsel %vm1109_vm7, %v1085_v21, %v4150_v18 }
 0x12d   : > { %v975_v52 = vpop.permute.xlu0 %974  ;;  %v1153_v16 = vsel %vm1137_vm8, %v1125_v15, %v719_v41  ;;  %v1141_v49 = vsel %vm1137_vm8, %v1113_v7, %v695_v45 }
 0x12e   : > { %642 = vrot.lane.b32.xlu1 %v3710_v62, %s3449_s29  ;;  %v1181_v2 = vsel %vm1165_vm9, %v1153_v16, %v803_v50  ;;  %v1169_v62 = vsel %vm1165_vm9, %v1141_v49, %v779_v36  ;;  %v1040_v36 = vsel %vm1025_vm4, %v3608_v32, %v3955_v44 }
 0x12f   : > { %620 = vrot.lane.b32.xlu0 %v3643_v43, %s3449_s29  ;;  %v1209_v1 = vsel %vm1193_vm10, %v1181_v2, %v889_v56  ;;  %v1197_v43 = vsel %vm1193_vm10, %v1169_v62, %v865_v53 }
 0x130   : > { %v863_v37 = vpop.permute.xlu1 %862  ;;  %v1237_v18 = vsel %vm1221_vm11, %v1209_v1, %v975_v52  ;;  %v1225_v5 = vsel %vm1221_vm11, %v1197_v43, %v951_v59 }
 0x131   : > { %v4263_v28 = vpop.permute.xlu0 %720  ;;  %v1492_v50 = vcombine.high %v1237_v18, %v1237_v18  ;;  %v1499_v15 = vrot.slane %v1237_v18, %v4115_v23  ;;  %v1328_v53 = vcombine.high %v1225_v5, %v1225_v5  ;;  %v1335_v52 = vrot.slane %v1225_v5, %v4115_v23 }
 0x132   : > { %704 = vrot.lane.b32.xlu1 %v3786_v26, %s3448_s28  ;;  %v1028_v26 = vsel %vm1025_vm4, %v3519_v0, %v3892_v20 }
 0x133   : > { %644 = vrot.lane.b32.xlu0 %v3745_v25, %s3449_s29  ;;  %v1068_v25 = vsel %vm1053_vm5, %v1040_v36, %v4074_v6  ;;  %v1056_v44 = vsel %vm1053_vm5, %v1028_v26, %v4019_v34  ;;  %v4306_v34 = vrot.slane %v1492_v50, %v4115_v23  ;;  %v1507_v33 = vcombine.high %v1499_v15, %v1499_v15  ;;  %v4347_v50 = vld [vmem:[%s3516_s24 + $0xe0] sm:$0xff] }
 0x134   : > { %v4274_v45 = vpop.permute.xlu1 %468  ;;  %v1096_v56 = vsel %vm1081_vm6, %v1068_v25, %v4175_v9  ;;  %v1084_v0 = vsel %vm1081_vm6, %v1056_v44, %v4162_v11  ;;  %v4313_v9 = vrot.slane %v1328_v53, %v4115_v23  ;;  %v5439_v25 = vld [vmem:[#allocation3_spill] sm:$0xff] }
 0x135   : > { %v887_v41 = vpop.permute.xlu0 %886  ;;  %v1124_v20 = vsel %vm1109_vm7, %v1096_v56, %v4190_v12  ;;  %v1112_v60 = vsel %vm1109_vm7, %v1084_v0, %v4182_v42  ;;  %v1343_v12 = vcombine.high %v1335_v52, %v1335_v52  ;;  %v1861_v7 = vcombine.low %v1507_v33, %v4306_v34 }
 0x136   : > { %728 = vrot.lane.b32.xlu1 %v4052_v14, %s3448_s28  ;;  %v1140_v11 = vsel %vm1137_vm8, %v1112_v60, %v4202_v61  ;;  %v1042_v53 = vsel %vm1025_vm4, %v5439_v25, %v3963_v10  ;;  %v598_v10 = vrot.slane %v4347_v50, 1  ;;  %v5441_v60 = vld [vmem:[#allocation2_spill] sm:$0xff] }
 0x137   : > { %706 = vrot.lane.b32.xlu0 %v3811_v58, %s3448_s28  ;;  %v1152_v58 = vsel %vm1137_vm8, %v1124_v20, %v717_v17  ;;  %v1168_v42 = vsel %vm1165_vm9, %v1140_v11, %v777_v57  ;;  %v1875_v18 = vrot.slane %v1861_v7, %v4115_v23 }
 0x138   : > { %v4294_v59 = vpop.permute.xlu1 %804  ;;  %v1180_v30 = vsel %vm1165_vm9, %v1152_v58, %v801_v35  ;;  %v1708_v35 = vcombine.low %v1343_v12, %v4313_v9 }
 0x139   : > { %v4300_v6 = vpop.permute.xlu0 %780  ;;  %v1208_v17 = vsel %vm1193_vm10, %v1180_v30, %v887_v41 }
 0x13a   : > { %476 = vrot.lane.b32.xlu1 %v4064_v22, %s3446_s26  ;;  %v1196_v22 = vsel %vm1193_vm10, %v1168_v42, %v863_v37  ;;  %v4332_v37 = vld [vmem:[%s3516_s24 + $0xd8] sm:$0xff]  ;;  %v1722_v5 = vrot.slane %v1708_v35, %v4115_v23 }
 0x13b   : > { %730 = vrot.lane.b32.xlu0 %v4165_v48, %s3448_s28  ;;  %v597_v44 = vrot.slane %v4332_v37, 1 }
 0x13c   : > { %v973_v4 = vpop.permute.xlu1 %972 }
 0x13d   : > { %v1236_v21 = vsel %vm1221_vm11, %v1208_v17, %v973_v4  ;;  %v949_v61 = vpop.permute.xlu0 %948 }
 0x13e   : > { %v1491_v16 = vrot.slane %v1236_v21, %v4115_v23  ;;  %v1224_v49 = vsel %vm1221_vm11, %v1196_v22, %v949_v61  ;;  %790 = vrot.lane.b32.xlu1 %v3627_v38, %s3451_s7  ;;  %v5442_v22 = vld [vmem:[#allocation9_spill] sm:$0xff] }
 0x13f   : > { %v1327_v57 = vrot.slane %v1224_v49, %v4115_v23  ;;  %788 = vrot.lane.b32.xlu0 %v3608_v32, %s3451_s7 }
 0x140   : > { %v1860_v2 = vcombine.low %v1491_v16, %v1499_v15  ;;  %v4334_v62 = vpop.permute.xlu1 %552 }
 0x141   : > { %v1707_v1 = vcombine.low %v1327_v57, %v1335_v52  ;;  %v4336_v43 = vpop.permute.xlu0 %528  ;;  %v1030_v52 = vsel %vm1025_vm4, %v3537_v8, %v3912_v27 }
 0x142   : > { %v1868_v38 = vrot.slane %v1860_v2, %v4115_v23  ;;  %814 = vrot.lane.b32.xlu1 %v4332_v37, %s3451_s7  ;;  %v683_v2 = vrot.slane %v4332_v37, 2 }
 0x143   : > { %v1715_v41 = vrot.slane %v1707_v1, %v4115_v23  ;;  %812 = vrot.lane.b32.xlu0 %v3716_v3, %s3451_s7  ;;  %v1070_v3 = vsel %vm1053_vm5, %v1042_v53, %v4082_v29 }
 0x144   : > { %v891_v32 = vpop.permute.xlu1 %890  ;;  %v1876_v36 = vcombine.low %v1868_v38, %v1875_v18  ;;  %v1098_v56 = vsel %vm1081_vm6, %v1070_v3, %v4204_v46  ;;  %v5440_v46 = vld [vmem:[#allocation4_spill] sm:$0xff]  ;;  %v684_v18 = vrot.slane %v4347_v50, 2  ;;  %v5444_v3 = vld [vmem:[#allocation45_spill] sm:$0xff] }
 0x145   : > { %v867_v15 = vpop.permute.xlu0 %866  ;;  %v1723_v26 = vcombine.low %v1715_v41, %v1722_v5 }
 0x146   : > { %560 = vrot.lane.b32.xlu1 %v3713_v63, %s3447_s27  ;;  %3286 = vmatmul.mubr.msk.f32.vlgmr.msra.gmra.mrb[0].mxu1 %vm2082_vm12, %v1876_v36  ;;  %v1058_v63 = vsel %vm1053_vm5, %v1030_v52, %v4027_v24  ;;  %v4445_v25 = vsel %vm386_vm1, %v683_v2, %v684_v18 }
 0x147   : > { %536 = vrot.lane.b32.xlu0 %v3605_v31, %s3447_s27  ;;  %3259 = vmatmul.mubr.msk.f32.gmra.mrb[4].mxu0 %vm2082_vm12, %v1723_v26  ;;  %v1086_v8 = vsel %vm1081_vm6, %v1058_v63, %v4196_v54  ;;  %v1126_v31 = vsel %vm1109_vm7, %v1098_v56, %v4227_v47  ;;  %v4396_v47 = vsel %vm259_vm0, %v597_v44, %v598_v10  ;;  %v5443_v26 = vld [vmem:[#allocation10_spill] sm:$0xff] }
 0x148   : > { %v4369_v0 = vpop.permute.xlu1 %638  ;;  %3288 = vmatprep.mubr.msk.f32.mxu1 %vm3455_vm3, %v5436_v19  ;;  %3261 = vmatprep.mubr.msk.f32.mxu0 %vm3455_vm3, %v5436_v19  ;;  %v1114_v24 = vsel %vm1109_vm7, %v1086_v8, %v4217_v51  ;;  %v1154_v29 = vsel %vm1137_vm8, %v1126_v31, %v4263_v28  ;;  %v5445_v56 = vld [vmem:[#allocation46_spill] sm:$0xff]  ;;  %v5446_v8 = vld [vmem:[#allocation12_spill] sm:$0xff] }
 0x149   : > { %v4379_v27 = vpop.permute.xlu0 %614  ;;  %v1142_v20 = vsel %vm1137_vm8, %v1114_v24, %v4240_v55  ;;  %v1182_v54 = vsel %vm1165_vm9, %v1154_v29, %v4294_v59  ;;  %v1508_v59 = vcombine.high %v4306_v34, %v4306_v34 }
 0x14a   : > { %876 = vrot.lane.b32.xlu1 %v5440_v46, %s3452_s19  ;;  %v1170_v51 = vsel %vm1165_vm9, %v1142_v20, %v4300_v6  ;;  %v1210_v28 = vsel %vm1193_vm10, %v1182_v54, %v891_v32  ;;  %v1344_v6 = vcombine.high %v4313_v9, %v4313_v9  ;;  %v4480_v54 = vld [vmem:[%s3516_s24 + $0x80] sm:$0xff] }
 0x14b   : > { %874 = vrot.lane.b32.xlu0 %v5441_v60, %s3452_s19  ;;  %v1198_v33 = vsel %vm1193_vm10, %v1170_v51, %v867_v15 }
 0x14c   : > { %v977_v58 = vpop.permute.xlu1 %976 }
 0x14d   : > { %v1238_v55 = vsel %vm1221_vm11, %v1210_v28, %v977_v58  ;;  %v953_v11 = vpop.permute.xlu0 %952  ;;  %v4485_v28 = vld [vmem:[%s3516_s24 + $0xe8] sm:$0xf]  ;;  %v3384_v58 = vld [vmem:[%s3516_s24 + $0x70] sm:$0xf] }
 0x14e   : > { %v1509_v12 = vcombine.high %v1238_v55, %v1238_v55  ;;  %v1516_v30 = vrot.slane %v1238_v55, %v4115_v23  ;;  %v1226_v42 = vsel %vm1221_vm11, %v1198_v33, %v953_v11  ;;  %900 = vrot.lane.b32.xlu1 %v4396_v47, %s3452_s19  ;;  %v4494_v33 = vrot.slane %v4485_v28, 1 }
 0x14f   : > { %v1345_v17 = vcombine.high %v1226_v42, %v1226_v42  ;;  %v1352_v4 = vrot.slane %v1226_v42, %v4115_v23  ;;  %898 = vrot.lane.b32.xlu0 %v5442_v22, %s3452_s19  ;;  %v4528_v2 = vrot.slane %v4485_v28, 2 }
 0x150   : > { %v4415_v21 = vrot.slane %v1509_v12, %v4115_v23  ;;  %v1524_v34 = vcombine.high %v1516_v30, %v1516_v30  ;;  %v1877_v61 = vcombine.low %v1508_v59, %v1516_v30  ;;  %v4417_v7 = vpop.permute.xlu1 %550  ;;  %v3385_v59 = vld [vmem:[%s3516_s24 + $0xd0] sm:$0xf]  ;;  %v4506_v12 = vsel %vm259_vm0, %v598_v10, %v4494_v33 }
 0x151   : > { %v4420_v16 = vrot.slane %v1345_v17, %v4115_v23  ;;  %v1360_v49 = vcombine.high %v1352_v4, %v1352_v4  ;;  %v1724_v35 = vcombine.low %v1344_v6, %v1352_v4  ;;  %v4422_v57 = vpop.permute.xlu0 %526  ;;  %v5447_v6 = vld [vmem:[#allocation6_spill] sm:$0xff]  ;;  %v5448_v17 = vld [vmem:[#allocation17_spill] sm:$0xff] }
 0x152   : > { %v1878_v9 = vcombine.low %v1524_v34, %v4415_v21  ;;  %646 = vrot.lane.b32.xlu1 %v3740_v13, %s3449_s29  ;;  %v1885_v38 = vrot.slane %v1877_v61, %v4115_v23  ;;  %v5449_v61 = vld [vmem:[#allocation35_spill] sm:$0xff] }
 0x153   : > { %v1725_v1 = vcombine.low %v1360_v49, %v4420_v16  ;;  %622 = vrot.lane.b32.xlu0 %v3638_v40, %s3449_s29  ;;  %v1732_v32 = vrot.slane %v1724_v35, %v4115_v23 }
 0x154   : > { %v1892_v5 = vrot.slane %v1878_v9, %v4115_v23  ;;  %v4434_v41 = vpop.permute.xlu1 %724 }
 0x155   : > { %v1739_v36 = vrot.slane %v1725_v1, %v4115_v23  ;;  %v701_v13 = vpop.permute.xlu0 %700 }
 0x156   : > { %962 = vrot.lane.b32.xlu1 %v3838_v39, %s3454_s22  ;;  %v1893_v15 = vcombine.low %v1885_v38, %v1892_v5  ;;  %v4534_v5 = vld [vmem:[%s3516_s24 + $0x90] sm:$0xff] }
 0x157   : > { %960 = vrot.lane.b32.xlu0 %v5443_v26, %s3454_s22  ;;  %v1740_v40 = vcombine.low %v1732_v32, %v1739_v36 }
 0x158   : > { %v4447_v53 = vpop.permute.xlu1 %612  ;;  %3289 = vmatmul.mubr.msk.f32.gmra.mrb[2].mxu1 %vm2082_vm12, %v1893_v15 }
 0x159   : > { %3262 = vmatmul.mubr.msk.f32.gmra.mrb[6].mxu0 %vm2082_vm12, %v1740_v40  ;;  %v4451_v52 = vpop.permute.xlu0 %470  ;;  %3291 = vmatprep.mubr.msk.f32.mxu1 %vm3455_vm3, %v5436_v19  ;;  %v4554_v40 = vsel %vm386_vm1, %v684_v18, %v4528_v2  ;;  %v5452_v18 = vld [vmem:[#allocation36_spill] sm:$0xff] }
 0x15a   : > { %986 = vrot.lane.b32.xlu1 %v4445_v25, %s3454_s22  ;;  %3264 = vmatprep.mubr.msk.f32.mxu0 %vm3455_vm3, %v5436_v19 }
 0x15b   : > { %984 = vrot.lane.b32.xlu0 %v5444_v3, %s3454_s22 }
 0x15c   : > { %v785_v44 = vpop.permute.xlu1 %784 }
 0x15d   : > { %v4461_v63 = vpop.permute.xlu0 %636 }
 0x15e   : > { %732 = vrot.lane.b32.xlu1 %v5445_v56, %s3448_s28 }
 0x15f   : > { %708 = vrot.lane.b32.xlu0 %v5446_v8, %s3448_s28 }
 0x160   : > { %v4467_v31 = vpop.permute.xlu1 %530 }
 0x161   : > { %v809_v24 = vpop.permute.xlu0 %808 }
 0x162   : > { %480 = vrot.lane.b32.xlu1 %v4165_v48, %s3446_s26 }
 0x163   : > { %478 = vrot.lane.b32.xlu0 %v4052_v14, %s3446_s26  ;;  %v3383_v14 = vld [vmem:[%s3516_s24 + $0x78] sm:$0xff] }
 0x164   : > { %v4473_v29 = vpop.permute.xlu1 %698 }
 0x165   : > { %v4475_v20 = vpop.permute.xlu0 %554 }
 0x166   : > { %816 = vrot.lane.b32.xlu1 %v4347_v50, %s3451_s7 }
 0x167   : > { %792 = vrot.lane.b32.xlu0 %v4480_v54, %s3451_s7 }
 0x168   : > { %v871_v51 = vpop.permute.xlu1 %870 }
 0x169   : > { %v4487_v48 = vpop.permute.xlu0 %722 }
 0x16a   : > { %540 = vrot.lane.b32.xlu1 %v3383_v14, %s3447_s27 }
 0x16b   : > { %538 = vrot.lane.b32.xlu0 %v3384_v58, %s3447_s27 }
 0x16c   : > { %v4496_v55 = vpop.permute.xlu1 %616 }
 0x16d   : > { %v895_v11 = vpop.permute.xlu0 %894 }
 0x16e   : > { %564 = vrot.lane.b32.xlu1 %v4332_v37, %s3447_s27  ;;  %v3386_v37 = vld [vmem:[%s3516_s24 + $0x30] sm:$0xff] }
 0x16f   : > { %562 = vrot.lane.b32.xlu0 %v3385_v59, %s3447_s27  ;;  %v1032_v4 = vsel %vm1025_vm4, %v3386_v37, %v5448_v17 }
 0x170   : > { %v783_v30 = vpop.permute.xlu1 %782  ;;  %v1060_v49 = vsel %vm1053_vm5, %v1032_v4, %v5449_v61 }
 0x171   : > { %v4508_v42 = vpop.permute.xlu0 %640  ;;  %v1088_v35 = vsel %vm1081_vm6, %v1060_v49, %v4336_v43  ;;  %v5450_v43 = vld [vmem:[#allocation26_spill] sm:$0xff] }
 0x172   : > { %902 = vrot.lane.b32.xlu1 %v4506_v12, %s3452_s19  ;;  %v1116_v9 = vsel %vm1109_vm7, %v1088_v35, %v4379_v27  ;;  %v5454_v35 = vld [vmem:[#allocation24_spill] sm:$0xff] }
 0x173   : > { %878 = vrot.lane.b32.xlu0 %v5447_v6, %s3452_s19  ;;  %v1144_v1 = vsel %vm1137_vm8, %v1116_v9, %v701_v13 }
 0x174   : > { %v957_v34 = vpop.permute.xlu1 %956  ;;  %v1172_v32 = vsel %vm1165_vm9, %v1144_v1, %v785_v44 }
 0x175   : > { %v807_v10 = vpop.permute.xlu0 %806  ;;  %v1200_v36 = vsel %vm1193_vm10, %v1172_v32, %v871_v51  ;;  %v5451_v51 = vld [vmem:[#allocation14_spill] sm:$0xff] }
 0x176   : > { %626 = vrot.lane.b32.xlu1 %v5440_v46, %s3449_s29  ;;  %v1044_v46 = vsel %vm1025_vm4, %v4534_v5, %v5450_v43  ;;  %v1228_v15 = vsel %vm1221_vm11, %v1200_v36, %v957_v34 }
 0x177   : > { %624 = vrot.lane.b32.xlu0 %v5441_v60, %s3449_s29  ;;  %v1072_v60 = vsel %vm1053_vm5, %v1044_v46, %v4274_v45  ;;  %v1376_v58 = vrot.slane %v1228_v15, %v4115_v23 }
 0x178   : > { %v4531_v38 = vpop.permute.xlu1 %702  ;;  %v1100_v13 = vsel %vm1081_vm6, %v1072_v60, %v4334_v62  ;;  %v3388_v62 = vld [vmem:[%s3516_s24 + $0x28] sm:$0xf] }
 0x179   : > { %v981_v27 = vpop.permute.xlu0 %980  ;;  %v1128_v45 = vsel %vm1109_vm7, %v1100_v13, %v4369_v0  ;;  %v1384_v49 = vcombine.high %v1376_v58, %v1376_v58 }
 0x17a   : > { %650 = vrot.lane.b32.xlu1 %v4396_v47, %s3449_s29  ;;  %v1156_v47 = vsel %vm1137_vm8, %v1128_v45, %v4434_v41  ;;  %v5453_v41 = vld [vmem:[#allocation13_spill] sm:$0xff]  ;;  %v1369_v45 = vcombine.high %v1228_v15, %v1228_v15  ;;  %v5457_v15 = vld [vmem:[#allocation38_spill] sm:$0xff] }
 0x17b   : > { %648 = vrot.lane.b32.xlu0 %v5442_v22, %s3449_s29  ;;  %v1031_v22 = vsel %vm1025_vm4, %v3388_v62, %v5451_v51  ;;  %v1184_v14 = vsel %vm1165_vm9, %v1156_v47, %v809_v24  ;;  %v1742_v60 = vcombine.low %v1376_v58, %v1384_v49  ;;  %v3390_v51 = vld [vmem:[%s3516_s24 + $0x38] sm:$0xff] }
 0x17c   : > { %v869_v44 = vpop.permute.xlu1 %868  ;;  %v1059_v0 = vsel %vm1053_vm5, %v1031_v22, %v5452_v18  ;;  %v1212_v59 = vsel %vm1193_vm10, %v1184_v14, %v895_v11  ;;  %v3389_v11 = vld [vmem:[%s3516_s24 + $0x88] sm:$0xf] }
 0x17d   : > { %v4560_v8 = vpop.permute.xlu0 %726  ;;  %v1087_v37 = vsel %vm1081_vm6, %v1059_v0, %v4422_v57  ;;  %v4577_v17 = vsel %vm1221_vm11, %v1212_v59, %v981_v27  ;;  %v1043_v9 = vsel %vm1025_vm4, %v3389_v11, %v5454_v35  ;;  %v5456_v22 = vld [vmem:[#allocation15_spill] sm:$0xff]  ;;  %v1525_v0 = vcombine.high %v4415_v21, %v4415_v21 }
 0x17e   : > { %988 = vrot.lane.b32.xlu1 %v4554_v40, %s3454_s22  ;;  %v1115_v4 = vsel %vm1109_vm7, %v1087_v37, %v4447_v53  ;;  %v1540_v1 = vrot.slane %v4577_v17, %v4115_v23  ;;  %v5455_v53 = vld [vmem:[#allocation44_spill] sm:$0xff]  ;;  %v1033_v14 = vsel %vm1025_vm4, %v3390_v51, %v5456_v22 }
 0x17f   : > { %964 = vrot.lane.b32.xlu0 %v5453_v41, %s3454_s22  ;;  %v1143_v61 = vsel %vm1137_vm8, %v1115_v4, %v4473_v29  ;;  %v1071_v43 = vsel %vm1053_vm5, %v1043_v9, %v5455_v53  ;;  %v1383_v4 = vrot.slane %v1369_v45, %v4115_v23  ;;  %v4636_v9 = vld [vmem:[%s3516_s24 + $0x98] sm:$0xff] }
 0x180   : > { %v787_v24 = vpop.permute.xlu1 %786  ;;  %v1171_v57 = vsel %vm1165_vm9, %v1143_v61, %v783_v30 }
 0x181   : > { %v893_v34 = vpop.permute.xlu0 %892  ;;  %v1199_v29 = vsel %vm1193_vm10, %v1171_v57, %v869_v44  ;;  %v1385_v53 = vcombine.high %v1383_v4, %v1383_v4 }
 0x182   : > { %712 = vrot.lane.b32.xlu1 %v3838_v39, %s3448_s28  ;;  %v1099_v39 = vsel %vm1081_vm6, %v1071_v43, %v4417_v7  ;;  %v1548_v7 = vcombine.high %v1540_v1, %v1540_v1 }
 0x183   : > { %710 = vrot.lane.b32.xlu0 %v5443_v26, %s3448_s28  ;;  %v1127_v30 = vsel %vm1109_vm7, %v1099_v39, %v4461_v63  ;;  %v1361_v26 = vcombine.high %v4420_v16, %v4420_v16 }
 0x184   : > { %v955_v46 = vpop.permute.xlu1 %954  ;;  %v1155_v13 = vsel %vm1137_vm8, %v1127_v30, %v4487_v48  ;;  %v1895_v18 = vcombine.low %v1540_v1, %v1548_v7 }
 0x185   : > { %v1227_v32 = vsel %vm1221_vm11, %v1199_v29, %v955_v46  ;;  %v811_v27 = vpop.permute.xlu0 %810  ;;  %v1183_v44 = vsel %vm1165_vm9, %v1155_v13, %v807_v10  ;;  %v1061_v10 = vsel %vm1053_vm5, %v1033_v14, %v5457_v15  ;;  %v4657_v46 = vld [vmem:[%s3516_s24 + $0xf0] sm:$0xff] }
 0x186   : > { %v1368_v36 = vrot.slane %v1227_v32, %v4115_v23  ;;  %736 = vrot.lane.b32.xlu1 %v4445_v25, %s3448_s28  ;;  %v1211_v62 = vsel %vm1193_vm10, %v1183_v44, %v893_v34  ;;  %v1756_v25 = vrot.slane %v1742_v60, %v4115_v23  ;;  %v1089_v37 = vsel %vm1081_vm6, %v1061_v10, %v4467_v31  ;;  %v4685_v44 = vld [vmem:[%s3516_s24 + $0xf8] sm:$0xff] }
 0x187   : > { %734 = vrot.lane.b32.xlu0 %v5444_v3, %s3448_s28  ;;  %v1117_v49 = vsel %vm1109_vm7, %v1089_v37, %v4496_v55  ;;  %v1909_v55 = vrot.slane %v1895_v18, %v4115_v23  ;;  %v853_v51 = vrot.slane %v4657_v46, 1  ;;  %v854_v14 = vrot.slane %v4685_v44, 1 }
 0x188   : > { %v1741_v63 = vcombine.low %v1361_v26, %v1368_v36  ;;  %v873_v47 = vpop.permute.xlu1 %872  ;;  %v1145_v57 = vsel %vm1137_vm8, %v1117_v49, %v4531_v38  ;;  %v1758_v26 = vcombine.low %v1383_v4, %v1385_v53  ;;  %v4753_v53 = vld [vmem:[%s3516_s24 + $0x100] sm:$0xf] }
 0x189   : > { %v979_v16 = vpop.permute.xlu0 %978 }
 0x18a   : > { %v1749_v48 = vrot.slane %v1741_v63, %v4115_v23  ;;  %v1239_v58 = vsel %vm1221_vm11, %v1211_v62, %v979_v16  ;;  %794 = vrot.lane.b32.xlu1 %v3389_v11, %s3451_s7  ;;  %v1533_v11 = vcombine.high %v4577_v17, %v4577_v17  ;;  %v1173_v17 = vsel %vm1165_vm9, %v1145_v57, %v787_v24  ;;  %v5462_v57 = vld [vmem:[#allocation16_spill] sm:$0xff] }
 0x18b   : > { %v1532_v59 = vrot.slane %v1239_v58, %v4115_v23  ;;  %482 = vrot.lane.b32.xlu0 %v5445_v56, %s3446_s26  ;;  %v5458_v56 = vld [vmem:[#allocation25_spill] sm:$0xff]  ;;  %v1201_v43 = vsel %vm1193_vm10, %v1173_v17, %v873_v47  ;;  %v1766_v62 = vrot.slane %v1758_v26, %v4115_v23 }
 0x18c   : > { %v4629_v34 = vpop.permute.xlu1 %472  ;;  %v1757_v61 = vcombine.low %v1749_v48, %v1756_v25  ;;  %v1045_v31 = vsel %vm1025_vm4, %v4636_v9, %v5458_v56  ;;  %v1547_v39 = vrot.slane %v1533_v11, %v4115_v23  ;;  %v5459_v47 = vld [vmem:[#allocation5_spill] sm:$0xff]  ;;  %v940_v56 = vrot.slane %v4685_v44, 2 }
 0x18d   : > { %v1894_v21 = vcombine.low %v1525_v0, %v1532_v59  ;;  %v897_v35 = vpop.permute.xlu0 %896  ;;  %v1073_v38 = vsel %vm1053_vm5, %v1045_v31, %v4451_v52  ;;  %v855_v0 = vsel %vm259_vm0, %v853_v51, %v854_v14  ;;  %v5466_v51 = vld [vmem:[#allocation19_spill] sm:$0xff] }
 0x18e   : > { %818 = vrot.lane.b32.xlu1 %v4485_v28, %s3451_s7  ;;  %3265 = vmatmul.mubr.msk.f32.gmra.mrb[8].mxu0 %vm2082_vm12, %v1757_v61  ;;  %v1101_v24 = vsel %vm1081_vm6, %v1073_v38, %v4475_v20 }
 0x18f   : > { %v1902_v1 = vrot.slane %v1894_v21, %v4115_v23  ;;  %796 = vrot.lane.b32.xlu0 %v4534_v5, %s3451_s7  ;;  %3267 = vmatprep.mubr.msk.f32.mxu0 %vm3455_vm3, %v5436_v19  ;;  %v1129_v52 = vsel %vm1109_vm7, %v1101_v24, %v4508_v42  ;;  %v1549_v42 = vcombine.high %v1547_v39, %v1547_v39  ;;  %v5461_v21 = vld [vmem:[#allocation11_spill] sm:$0xff] }
 0x190   : > { %v959_v29 = vpop.permute.xlu1 %958  ;;  %v1157_v20 = vsel %vm1137_vm8, %v1129_v52, %v4560_v8  ;;  %v3191_v52 = vld [vmem:[%s5365_s2] ss:$0 sm:$0xff] }
 0x191   : > { %v4663_v32 = vsel %vm1221_vm11, %v1201_v43, %v959_v29  ;;  %v4665_v5 = vpop.permute.xlu0 %474  ;;  %v1910_v30 = vcombine.low %v1902_v1, %v1909_v55  ;;  %v1185_v36 = vsel %vm1165_vm9, %v1157_v20, %v811_v27  ;;  %v1911_v25 = vcombine.low %v1547_v39, %v1549_v42 }
 0x192   : > { %v1393_v60 = vrot.slane %v4663_v32, %v4115_v23  ;;  %542 = vrot.lane.b32.xlu1 %v4480_v54, %s3447_s27  ;;  %v1213_v54 = vsel %vm1193_vm10, %v1185_v36, %v897_v35  ;;  %v856_v29 = vrot.slane %v4753_v53, 1  ;;  %v1656_v36 = vcombine.high %v3191_v52, %v3191_v52 }
 0x193   : > { %820 = vrot.lane.b32.xlu0 %v4657_v46, %s3451_s7  ;;  %3292 = vmatmul.mubr.msk.f32.gmra.mrb[4].mxu1 %vm2082_vm12, %v1910_v30  ;;  %v1919_v59 = vrot.slane %v1911_v25, %v4115_v23  ;;  %v942_v30 = vrot.slane %v4753_v53, 2  ;;  %v5467_v25 = vld [vmem:[#allocation40_spill] sm:$0xff] }
 0x194   : > { %v1401_v13 = vcombine.high %v1393_v60, %v1393_v60  ;;  %v4679_v7 = vpop.permute.xlu1 %532  ;;  %3294 = vmatprep.mubr.msk.f32.mxu1 %vm3455_vm3, %v5436_v19  ;;  %v857_v39 = vsel %vm259_vm0, %v854_v14, %v856_v29 }
 0x195   : > { %v983_v45 = vpop.permute.xlu0 %982  ;;  %v943_v20 = vsel %vm386_vm1, %v940_v56, %v942_v30 }
 0x196   : > { %v1759_v8 = vcombine.low %v1393_v60, %v1401_v13  ;;  %v4688_v63 = vsel %vm1221_vm11, %v1213_v54, %v983_v45  ;;  %880 = vrot.lane.b32.xlu1 %v5459_v47, %s3452_s19  ;;  %v1386_v13 = vcombine.high %v4663_v32, %v4663_v32  ;;  %v4787_v45 = vrot.slane %v3191_v52, %v4115_v23 }
 0x197   : > { %v1557_v27 = vrot.slane %v4688_v63, %v4115_v23  ;;  %566 = vrot.lane.b32.xlu0 %v4347_v50, %s3447_s27  ;;  %v5460_v50 = vld [vmem:[#allocation8_spill] sm:$0xff] }
 0x198   : > { %v1773_v16 = vrot.slane %v1759_v8, %v4115_v23  ;;  %v4699_v22 = vpop.permute.xlu1 %556  ;;  %v4799_v32 = vcombine.high %v4787_v45, %v4787_v45 }
 0x199   : > { %v1565_v48 = vcombine.high %v1557_v27, %v1557_v27  ;;  %v4702_v58 = vpop.permute.xlu0 %534 }
 0x19a   : > { %904 = vrot.lane.b32.xlu1 %v4494_v33, %s3452_s19  ;;  %v1774_v15 = vcombine.low %v1766_v62, %v1773_v16  ;;  %v5465_v62 = vld [vmem:[#allocation18_spill] sm:$0xff] }
 0x19b   : > { %v1912_v10 = vcombine.low %v1557_v27, %v1565_v48  ;;  %882 = vrot.lane.b32.xlu0 %v5460_v50, %s3452_s19  ;;  %v3392_v27 = vld [vmem:[%s3516_s24 + $0x48] sm:$0xff] }
 0x19c   : > { %v4708_v18 = vpop.permute.xlu1 %618  ;;  %3268 = vmatmul.mubr.msk.f32.gmra.mrb[10].mxu0 %vm2082_vm12, %v1774_v15  ;;  %v1550_v15 = vcombine.high %v4688_v63, %v4688_v63  ;;  %v5468_v50 = vld [vmem:[#allocation27_spill] sm:$0xff] }
 0x19d   : > { %v1926_v37 = vrot.slane %v1912_v10, %v4115_v23  ;;  %v4714_v4 = vpop.permute.xlu0 %558  ;;  %3270 = vmatprep.mubr.msk.f32.mxu0 %vm3455_vm3, %v5436_v19  ;;  %v3394_v10 = vld [vmem:[%s3516_s24 + $0xa8] sm:$0xff] }
 0x19e   : > { %628 = vrot.lane.b32.xlu1 %v5447_v6, %s3449_s29  ;;  %v939_v6 = vrot.slane %v4657_v46, 2  ;;  %v1564_v52 = vrot.slane %v1550_v15, %v4115_v23 }
 0x19f   : > { %906 = vrot.lane.b32.xlu0 %v855_v0, %s3452_s19  ;;  %v1927_v61 = vcombine.low %v1919_v59, %v1926_v37  ;;  %v1047_v0 = vsel %vm1025_vm4, %v3394_v10, %v5468_v50  ;;  %v5469_v59 = vld [vmem:[#allocation37_spill] sm:$0xff] }
 0x1a0   : > { %v4721_v49 = vpop.permute.xlu1 %642  ;;  %v941_v17 = vsel %vm386_vm1, %v939_v6, %v940_v56  ;;  %v3395_v56 = vld [vmem:[%s3516_s24 + $0xa0] sm:$0xf] }
 0x1a1   : > { %3295 = vmatmul.mubr.msk.f32.gmra.mrb[6].mxu1 %vm2082_vm12, %v1927_v61  ;;  %v4724_v11 = vpop.permute.xlu0 %620 }
 0x1a2   : > { %966 = vrot.lane.b32.xlu1 %v5461_v21, %s3454_s22  ;;  %3297 = vmatprep.mubr.msk.f32.mxu1 %vm3455_vm3, %v5436_v19 }
 0x1a3   : > { %652 = vrot.lane.b32.xlu0 %v4506_v12, %s3449_s29 }
 0x1a4   : > { %v4733_v35 = vpop.permute.xlu1 %704 }
 0x1a5   : > { %v4736_v31 = vpop.permute.xlu0 %644 }
 0x1a6   : > { %990 = vrot.lane.b32.xlu1 %v4528_v2, %s3454_s22 }
 0x1a7   : > { %968 = vrot.lane.b32.xlu0 %v5462_v57, %s3454_s22  ;;  %v5470_v57 = vld [vmem:[#allocation28_spill] sm:$0xff] }
 0x1a8   : > { %v4742_v55 = vpop.permute.xlu1 %728  ;;  %v1046_v63 = vsel %vm1025_vm4, %v3395_v56, %v5470_v57  ;;  %v3396_v57 = vld [vmem:[%s3516_s24 + $0xc0] sm:$0xff] }
 0x1a9   : > { %v707_v1 = vpop.permute.xlu0 %706 }
 0x1aa   : > { %714 = vrot.lane.b32.xlu1 %v5453_v41, %s3448_s28  ;;  %v5463_v41 = vld [vmem:[#allocation7_spill] sm:$0xff] }
 0x1ab   : > { %992 = vrot.lane.b32.xlu0 %v941_v17, %s3454_s22 }
 0x1ac   : > { %v4748_v12 = vpop.permute.xlu1 %476 }
 0x1ad   : > { %v4750_v38 = vpop.permute.xlu0 %730 }
 0x1ae   : > { %798 = vrot.lane.b32.xlu1 %v4636_v9, %s3451_s7 }
 0x1af   : > { %738 = vrot.lane.b32.xlu0 %v4554_v40, %s3448_s28  ;;  %v5464_v40 = vld [vmem:[#allocation32_spill] sm:$0xff] }
 0x1b0   : > { %v791_v43 = vpop.permute.xlu1 %790 }
 0x1b1   : > { %v789_v46 = vpop.permute.xlu0 %788 }
 0x1b2   : > { %884 = vrot.lane.b32.xlu1 %v5463_v41, %s3452_s19  ;;  %v2020_v41 = vcombine.low %v4787_v45, %v4799_v32 }
 0x1b3   : > { %822 = vrot.lane.b32.xlu0 %v4685_v44, %s3451_s7  ;;  %v4792_v44 = vrot.slane %v1656_v36, %v4115_v23 }
 0x1b4   : > { %v4764_v24 = vpop.permute.xlu1 %814 }
 0x1b5   : > { %v4768_v9 = vpop.permute.xlu0 %812  ;;  %v4808_v16 = vcombine.high %v4792_v44, %v4792_v44 }
 0x1b6   : > { %970 = vrot.lane.b32.xlu1 %v5464_v40, %s3454_s22 }
 0x1b7   : > { %908 = vrot.lane.b32.xlu0 %v857_v39, %s3452_s19 }
 0x1b8   : > { %v4776_v60 = vpop.permute.xlu1 %560 }
 0x1b9   : > { %v4779_v26 = vpop.permute.xlu0 %536 }
 0x1ba   : > { %484 = vrot.lane.b32.xlu1 %v5444_v3, %s3446_s26  ;;  %v1400_v3 = vrot.slane %v1386_v13, %v4115_v23  ;;  %s185_s26 = smul.u32 9, %s3427_s12 }
 0x1bb   : > { %994 = vrot.lane.b32.xlu0 %v943_v20, %s3454_s22  ;;  %s3329_s12 = smul.u32 54, %s5495_s13 }
 0x1bc   : > { %v877_v42 = vpop.permute.xlu1 %876  ;;  %v1402_v61 = vcombine.high %v1400_v3, %v1400_v3  ;;  %p188_p6 = scmp.lt.s32.totalorder %s185_s26, 17 }
 0x1bd   : > { %v875_v54 = vpop.permute.xlu0 %874 }
 0x1be   : > { %654 = vrot.lane.b32.xlu1 %v4494_v33, %s3449_s29  ;;  %v1035_v33 = vsel %vm1025_vm4, %v3392_v27, %v5465_v62  ;;  %v1566_v27 = vcombine.high %v1564_v52, %v1564_v52  ;;  %s5497_s26 = smov (!%p188_p6, %s185_s26), 17 }
 0x1bf   : > { %568 = vrot.lane.b32.xlu0 %v4485_v28, %s3447_s27  ;;  %v3393_v28 = vld [vmem:[%s3516_s24 + $0x40] sm:$0xf]  ;;  %v1063_v48 = vsel %vm1053_vm5, %v1035_v33, %v5467_v25  ;;  %s3328_s27 = smul.u32 3, %s5497_s26 }
 0x1c0   : > { %v901_v8 = vpop.permute.xlu1 %900  ;;  %v1034_v14 = vsel %vm1025_vm4, %v3393_v28, %v5466_v51  ;;  %v1091_v21 = vsel %vm1081_vm6, %v1063_v48, %v4702_v58  ;;  %v1074_v58 = vsel %vm1053_vm5, %v1046_v63, %v4629_v34  ;;  %v1928_v48 = vcombine.low %v1564_v52, %v1566_v27  ;;  %v5471_v63 = vld [vmem:[#allocation33_spill] sm:$0xff] }
 0x1c1   : > { %v899_v47 = vpop.permute.xlu0 %898  ;;  %v1062_v37 = vsel %vm1053_vm5, %v1034_v14, %v5469_v59  ;;  %v1119_v17 = vsel %vm1109_vm7, %v1091_v21, %v4724_v11  ;;  %v1075_v11 = vsel %vm1053_vm5, %v1047_v0, %v4665_v5  ;;  %v1102_v5 = vsel %vm1081_vm6, %v1074_v58, %v4699_v22  ;;  %v5472_v58 = vld [vmem:[#allocation29_spill] sm:$0xff] }
 0x1c2   : > { %824 = vrot.lane.b32.xlu1 %v4753_v53, %s3451_s7  ;;  %v1147_v40 = vsel %vm1137_vm8, %v1119_v17, %v707_v1  ;;  %v1103_v1 = vsel %vm1081_vm6, %v1075_v11, %v4714_v4  ;;  %v1130_v4 = vsel %vm1109_vm7, %v1102_v5, %v4721_v49 }
 0x1c3   : > { %740 = vrot.lane.b32.xlu0 %v4528_v2, %s3448_s28  ;;  %v1090_v2 = vsel %vm1081_vm6, %v1062_v37, %v4679_v7  ;;  %v2021_v7 = vcombine.low %v4792_v44, %v4808_v16  ;;  %v1175_v34 = vsel %vm1165_vm9, %v1147_v40, %v791_v43  ;;  %s192_s28 = sadd.s32 %s3329_s12, %s3328_s27 }
 0x1c4   : > { %v4826_v6 = vpop.permute.xlu1 %646  ;;  %v1118_v39 = vsel %vm1109_vm7, %v1090_v2, %v4708_v18  ;;  %v1775_v18 = vcombine.low %v1400_v3, %v1402_v61  ;;  %v1203_v36 = vsel %vm1193_vm10, %v1175_v34, %v877_v42  ;;  %v1936_v61 = vrot.slane %v1928_v48, %v4115_v23  ;;  %s3189_s13 = sshll.u32 %s192_s28, 3 }
 0x1c5   : > { %v4835_v53 = vpop.permute.xlu0 %622  ;;  %v1146_v20 = vsel %vm1137_vm8, %v1118_v39, %v4733_v35  ;;  %v1131_v35 = vsel %vm1109_vm7, %v1103_v1, %v4736_v31  ;;  %v1158_v31 = vsel %vm1137_vm8, %v1130_v4, %v4742_v55  ;;  %v1050_v2 = vsel %vm1025_vm4, %v3396_v57, %v5471_v63  ;;  %s4951_s4 = scalar_lea.vmem %s5366_s3, %s3189_s13 }
 0x1c6   : > { %996 = vrot.lane.b32.xlu1 %v942_v30, %s3454_s22  ;;  %v1174_v30 = vsel %vm1165_vm9, %v1146_v20, %v789_v46  ;;  %v1159_v46 = vsel %vm1137_vm8, %v1131_v35, %v4750_v38  ;;  %v1186_v49 = vsel %vm1165_vm9, %v1158_v31, %v4768_v9  ;;  %v4895_v9 = vrot.slane %v2020_v41, %v4115_v23  ;;  %v3397_v41 = vld [vmem:[%s3516_s24 + $0xb8] sm:$0xf] }
 0x1c7   : > { %910 = vrot.lane.b32.xlu0 %v856_v29, %s3452_s19  ;;  %v1202_v43 = vsel %vm1193_vm10, %v1174_v30, %v875_v54  ;;  %v1187_v54 = vsel %vm1165_vm9, %v1159_v46, %v4764_v24  ;;  %v1214_v28 = vsel %vm1193_vm10, %v1186_v49, %v899_v47  ;;  %v1783_v47 = vrot.slane %v1775_v18, %v4115_v23 }
 0x1c8   : > { %v963_v13 = vpop.permute.xlu1 %962  ;;  %v1215_v38 = vsel %vm1193_vm10, %v1187_v54, %v901_v8  ;;  %v4898_v8 = vrot.slane %v2021_v7, %v4115_v23  ;;  %v1049_v39 = vsel %vm1025_vm4, %v3397_v41, %v5472_v58 }
 0x1c9   : > { %v4864_v29 = vsel %vm1221_vm11, %v1203_v36, %v963_v13  ;;  %v961_v3 = vpop.permute.xlu0 %960 }
 0x1ca   : > { %v4872_v42 = vrot.slane %v4864_v29, %v4115_v23  ;;  %v1230_v22 = vsel %vm1221_vm11, %v1202_v43, %v961_v3  ;;  %v4913_v56 = vcombine.low %v4895_v9, %v4898_v8 }
 0x1cb   : > { %v1409_v62 = vrot.slane %v1230_v22, %v4115_v23 }
 0x1cc   : > { %v987_v33 = vpop.permute.xlu1 %986 }
 0x1cd   : > { %v1776_v51 = vcombine.low %v1409_v62, %v4872_v42  ;;  %v4887_v14 = vsel %vm1221_vm11, %v1215_v38, %v987_v33  ;;  %v985_v55 = vpop.permute.xlu0 %984 }
 0x1ce   : > { %v4891_v24 = vrot.slane %v4887_v14, %v4115_v23  ;;  %v1242_v25 = vsel %vm1221_vm11, %v1214_v28, %v985_v55  ;;  %v1574_v58 = vcombine.high %v4887_v14, %v4887_v14 }
 0x1cf   : > { %v1790_v15 = vrot.slane %v1776_v51, %v4115_v23  ;;  %v1573_v10 = vrot.slane %v1242_v25, %v4115_v23 }
 0x1d0   : > { %v4903_v50 = vpop.permute.xlu1 %732 }
 0x1d1   : > { %v1929_v0 = vcombine.low %v1573_v10, %v4891_v24  ;;  %v4906_v59 = vpop.permute.xlu0 %708  ;;  %v1791_v37 = vcombine.low %v1783_v47, %v1790_v15 }
 0x1d3   : > { %v1943_v21 = vrot.slane %v1929_v0, %v4115_v23  ;;  %3271 = vmatmul.mubr.msk.f32.gmra.mrb[12].mxu0 %vm2082_vm12, %v1791_v37 }
 0x1d4   : > { %v481_v17 = vpop.permute.xlu1 %480  ;;  %3273 = vmatprep.mubr.msk.f32.mxu0 %vm3455_vm3, %v5436_v19 }
 0x1d5   : > { %v4924_v40 = vsel %vm1053_vm5, %v1050_v2, %v481_v17  ;;  %v479_v7 = vpop.permute.xlu0 %478  ;;  %v1944_v11 = vcombine.low %v1936_v61, %v1943_v21  ;;  %v3398_v2 = vld [vmem:[%s3516_s24 + $0xb0] sm:$0xff]  ;;  %v5473_v17 = vld [vmem:[#allocation30_spill] sm:$0xff] }
 0x1d6   : > { %v4927_v52 = vsel %vm1053_vm5, %v1049_v39, %v479_v7  ;;  %v2195_v20 = vpop.f32.mrb[0].mxu0  ;;  %v1048_v41 = vsel %vm1025_vm4, %v3398_v2, %v5473_v17  ;;  %v3399_v39 = vld [vmem:[%s3516_s24 + $0x50] sm:$0xff]  ;;  %v5474_v7 = vld [vmem:[#allocation21_spill] sm:$0xff] }
 0x1d7   : > { %v2196_v34 = vadd.f32 %v2195_v20, %v4913_v56  ;;  %v3254_v18 = vpop.f32.mrb[1].mxu0  ;;  %3298 = vmatmul.mubr.msk.f32.gmra.mrb[8].mxu1 %vm2082_vm12, %v1944_v11  ;;  %v1036_v11 = vsel %vm1025_vm4, %v3399_v39, %v5474_v7  ;;  %v1076_v20 = vsel %vm1053_vm5, %v1048_v41, %v4748_v12 }
 0x1d8   : > { %v817_v1 = vpop.permute.xlu1 %816  ;;  %3300 = vmatprep.mubr.msk.f32.mxu1 %vm3455_vm3, %v5436_v19 }
 0x1d9   : > { %v2320_v30 = vcombine.high %v2196_v34, %v2196_v34  ;;  %v2327_v36 = vrot.slane %v2196_v34, %v4115_v23  ;;  %v793_v13 = vpop.permute.xlu0 %792  ;;  %v1410_v34 = vcombine.high %v4864_v29, %v4864_v29 }
 0x1db   : > { %v2334_v5 = vrot.slane %v2320_v30, %v4115_v23  ;;  %v2335_v35 = vcombine.high %v2327_v36, %v2327_v36  ;;  %v5475_v30 = vld [vmem:[#allocation39_spill] sm:$0xff] }
 0x1dc   : > { %v4936_v43 = vpop.permute.xlu1 %540 }
 0x1dd   : > { %v2336_v3 = vcombine.high %v2334_v5, %v2334_v5  ;;  %v2667_v4 = vcombine.low %v2327_v36, %v2335_v35  ;;  %v4938_v46 = vpop.permute.xlu0 %538  ;;  %v1064_v36 = vsel %vm1053_vm5, %v1036_v11, %v5475_v30 }
 0x1de   : > { %v2200_v22 = vpop.f32.mrb[2].mxu0  ;;  %v1092_v14 = vsel %vm1081_vm6, %v1064_v36, %v4779_v26  ;;  %v1424_v26 = vrot.slane %v1410_v34, %v4115_v23 }
 0x1df   : > { %v2668_v27 = vcombine.low %v2334_v5, %v2336_v3  ;;  %v2201_v31 = vadd.f32 %v2200_v22, %v4913_v56  ;;  %v3257_v54 = vpop.f32.mrb[3].mxu0  ;;  %v2675_v49 = vrot.slane %v2667_v4, %v4115_v23  ;;  %v1104_v5 = vsel %vm1081_vm6, %v1076_v20, %v4776_v60 }
 0x1e0   : > { %v4941_v62 = vpop.permute.xlu1 %564  ;;  %v1132_v3 = vsel %vm1109_vm7, %v1104_v5, %v4826_v6  ;;  %v1120_v29 = vsel %vm1109_vm7, %v1092_v14, %v4835_v53  ;;  %v1588_v4 = vrot.slane %v1574_v58, %v4115_v23  ;;  %v1589_v60 = vcombine.high %v4891_v24, %v4891_v24 }
 0x1e1   : > { %v2682_v38 = vrot.slane %v2668_v27, %v4115_v23  ;;  %v2337_v33 = vcombine.high %v2201_v31, %v2201_v31  ;;  %v2344_v28 = vrot.slane %v2201_v31, %v4115_v23  ;;  %v4946_v51 = vpop.permute.xlu0 %562  ;;  %v1160_v22 = vsel %vm1137_vm8, %v1132_v3, %v4903_v50 }
 0x1e2   : > { %v1425_v6 = vcombine.high %v4872_v42, %v4872_v42  ;;  %v1148_v27 = vsel %vm1137_vm8, %v1120_v29, %v4906_v59  ;;  %v1188_v31 = vsel %vm1165_vm9, %v1160_v22, %v817_v1  ;;  %v2037_v5 = vcombine.low %v4787_v45, %v4787_v45 }
 0x1e3   : > { %v2683_v55 = vcombine.low %v2675_v49, %v2682_v38  ;;  %v2351_v25 = vrot.slane %v2337_v33, %v4115_v23  ;;  %v2352_v47 = vcombine.high %v2344_v28, %v2344_v28  ;;  %v1176_v53 = vsel %vm1165_vm9, %v1148_v27, %v793_v13 }
 0x1e4   : > { %v903_v48 = vpop.permute.xlu1 %902  ;;  %v1945_v33 = vcombine.low %v1589_v60, %v1588_v4  ;;  %v1792_v59 = vcombine.low %v1425_v6, %v1424_v26  ;;  %v2038_v14 = vcombine.low %v4799_v32, %v4792_v44  ;;  %v5476_v60 = vld [vmem:[#allocation20_spill] sm:$0xff] }
 0x1e5   : > { %3063 = vst.msk [vmem:[%s4951_s4] sm:$0xff] %vm1109_vm7, %v2683_v55  ;;  %v2353_v15 = vcombine.high %v2351_v25, %v2351_v25  ;;  %v2684_v10 = vcombine.low %v2344_v28, %v2352_v47  ;;  %v879_v0 = vpop.permute.xlu0 %878  ;;  %v1216_v54 = vsel %vm1193_vm10, %v1188_v31, %v903_v48  ;;  %v1590_v28 = vcombine.high %v1588_v4, %v1588_v4  ;;  %v3400_v4 = vld [vmem:[%s3516_s24 + $0x58] sm:$0xf] }
 0x1e6   : > { %v1204_v24 = vsel %vm1193_vm10, %v1176_v53, %v879_v0  ;;  %v1037_v22 = vsel %vm1025_vm4, %v3400_v4, %v5476_v60  ;;  %v5045_v53 = vrot.slane %v2037_v5, %v4115_v23 }
 0x1e7   : > { %v2685_v37 = vcombine.low %v2351_v25, %v2353_v15  ;;  %v2692_v21 = vrot.slane %v2684_v10, %v4115_v23  ;;  %v1426_v25 = vcombine.high %v1424_v26, %v1424_v26  ;;  %v1953_v10 = vrot.slane %v1945_v33, %v4115_v23  ;;  %v5477_v26 = vld [vmem:[#allocation42_spill] sm:$0xff] }
 0x1e8   : > { %v4956_v61 = vpop.permute.xlu1 %626  ;;  %v1065_v6 = vsel %vm1053_vm5, %v1037_v22, %v5477_v26  ;;  %v3401_v33 = vld [vmem:[%s3516_s24 + $0x60] sm:$0xff] }
 0x1e9   : > { %v2699_v57 = vrot.slane %v2685_v37, %v4115_v23  ;;  %v4960_v63 = vpop.permute.xlu0 %624  ;;  %v1800_v37 = vrot.slane %v1792_v59, %v4115_v23  ;;  %v1093_v27 = vsel %vm1081_vm6, %v1065_v6, %v4938_v46  ;;  %v5479_v59 = vld [vmem:[#allocation41_spill] sm:$0xff] }
 0x1ea   : > { %v1121_v44 = vsel %vm1109_vm7, %v1093_v27, %v4960_v63  ;;  %v1105_v63 = vsel %vm1081_vm6, %v4927_v52, %v4946_v51 }
 0x1eb   : > { %v2700_v18 = vcombine.low %v2692_v21, %v2699_v57 }
 0x1ec   : > { %v4978_v35 = vpop.permute.xlu1 %650 }
 0x1ed   : > { %3064 = vst.msk [vmem:[%s4951_s4 + $0x8] sm:$0xff] %vm1109_vm7, %v2700_v18  ;;  %v4986_v12 = vpop.permute.xlu0 %648 }
 0x1f0   : > { %v989_v49 = vpop.permute.xlu1 %988 }
 0x1f1   : > { %v1244_v38 = vsel %vm1221_vm11, %v1216_v54, %v989_v49  ;;  %v965_v50 = vpop.permute.xlu0 %964  ;;  %v5048_v54 = vrot.slane %v2038_v14, %v4115_v23 }
 0x1f2   : > { %v5006_v55 = vrot.slane %v1244_v38, %v4115_v23  ;;  %v1232_v42 = vsel %vm1221_vm11, %v1204_v24, %v965_v50  ;;  %v1591_v32 = vcombine.high %v1244_v38, %v1244_v38 }
 0x1f3   : > { %v1434_v1 = vrot.slane %v1232_v42, %v4115_v23  ;;  %v1427_v3 = vcombine.high %v1232_v42, %v1232_v42 }
 0x1f4   : > { %v1946_v13 = vcombine.low %v1590_v28, %v5006_v55  ;;  %v713_v47 = vpop.permute.xlu1 %712  ;;  %v5478_v28 = vld [vmem:[#allocation23_spill] sm:$0xff]  ;;  %v1606_v5 = vcombine.high %v5006_v55, %v5006_v55 }
 0x1f5   : > { %v1793_v48 = vcombine.low %v1426_v25, %v1434_v1  ;;  %v711_v15 = vpop.permute.xlu0 %710  ;;  %v1441_v49 = vrot.slane %v1427_v3, %v4115_v23  ;;  %v1442_v24 = vcombine.high %v1434_v1, %v1434_v1  ;;  %v1038_v46 = vsel %vm1025_vm4, %v3401_v33, %v5478_v28 }
 0x1f6   : > { %v1960_v0 = vrot.slane %v1946_v13, %v4115_v23  ;;  %v1149_v42 = vsel %vm1137_vm8, %v1121_v44, %v711_v15  ;;  %v1066_v25 = vsel %vm1053_vm5, %v1038_v46, %v5479_v59  ;;  %v1133_v15 = vsel %vm1109_vm7, %v1105_v63, %v4986_v12 }
 0x1f7   : > { %v1807_v21 = vrot.slane %v1793_v48, %v4115_v23  ;;  %v1094_v48 = vsel %vm1081_vm6, %v1066_v25, %v4936_v43  ;;  %v1443_v51 = vcombine.high %v1441_v49, %v1441_v49 }
 0x1f8   : > { %v5015_v57 = vpop.permute.xlu1 %736  ;;  %v1961_v2 = vcombine.low %v1953_v10, %v1960_v0  ;;  %v2053_v10 = vcombine.low %v5045_v53, %v5048_v54  ;;  %v1605_v0 = vrot.slane %v1591_v32, %v4115_v23  ;;  %v1122_v43 = vsel %vm1109_vm7, %v1094_v48, %v4956_v61 }
 0x1f9   : > { %v735_v17 = vpop.permute.xlu0 %734  ;;  %v1808_v41 = vcombine.low %v1800_v37, %v1807_v21  ;;  %v1809_v37 = vcombine.low %v1442_v24, %v1441_v49  ;;  %v1150_v12 = vsel %vm1137_vm8, %v1122_v43, %v713_v47  ;;  %v3402_v43 = vld [vmem:[%s3516_s24 + $0x68] sm:$0xff] }
 0x1fa   : > { %3301 = vmatmul.mubr.msk.f32.gmra.mrb[10].mxu1 %vm2082_vm12, %v1961_v2  ;;  %v1161_v52 = vsel %vm1137_vm8, %v1133_v15, %v735_v17  ;;  %v1962_v24 = vcombine.low %v1606_v5, %v1605_v0 }
 0x1fb   : > { %3274 = vmatmul.mubr.msk.f32.gmra.mrb[14].mxu0 %vm2082_vm12, %v1808_v41  ;;  %3303 = vmatprep.mubr.msk.f32.mxu1 %vm3455_vm3, %v5436_v19  ;;  %v1817_v4 = vrot.slane %v1809_v37, %v4115_v23 }
 0x1fc   : > { %v795_v58 = vpop.permute.xlu1 %794  ;;  %3276 = vmatprep.mubr.msk.f32.mxu0 %vm3455_vm3, %v5436_v19 }
 0x1fd   : > { %v5023_v39 = vpop.permute.xlu0 %482  ;;  %v1177_v13 = vsel %vm1165_vm9, %v1149_v42, %v795_v58  ;;  %v1106_v58 = vsel %vm1081_vm6, %v4924_v40, %v4941_v62  ;;  %v1607_v62 = vcombine.high %v1605_v0, %v1605_v0 }
 0x1fe   : > { %v1134_v27 = vsel %vm1109_vm7, %v1106_v58, %v4978_v35 }
 0x1ff   : > { %v1162_v59 = vsel %vm1137_vm8, %v1134_v27, %v5015_v57  ;;  %v5482_v27 = vld [vmem:[#allocation31_spill] sm:$0xff] }
 0x200   : > { %v819_v7 = vpop.permute.xlu1 %818 }
 0x201   : > { %v797_v11 = vpop.permute.xlu0 %796 }
 0x202   : > { %v1178_v14 = vsel %vm1165_vm9, %v1150_v12, %v797_v11  ;;  %v5481_v12 = vld [vmem:[#allocation43_spill] sm:$0xff] }
 0x204   : > { %v5025_v20 = vpop.permute.xlu1 %542 }
 0x205   : > { %v5027_v34 = vpop.permute.xlu0 %820 }
 0x206   : > { %v1190_v63 = vsel %vm1165_vm9, %v1162_v59, %v5027_v34 }
 0x208   : > { %v881_v18 = vpop.permute.xlu1 %880 }
 0x209   : > { %v5029_v30 = vpop.permute.xlu0 %566  ;;  %v1205_v38 = vsel %vm1193_vm10, %v1177_v13, %v881_v18  ;;  %v1189_v18 = vsel %vm1165_vm9, %v1161_v52, %v819_v7  ;;  %v1970_v52 = vrot.slane %v1962_v24, %v4115_v23 }
 0x20c   : > { %v905_v36 = vpop.permute.xlu1 %904 }
 0x20d   : > { %v883_v29 = vpop.permute.xlu0 %882  ;;  %v1217_v61 = vsel %vm1193_vm10, %v1189_v18, %v905_v36 }
 0x20e   : > { %v1206_v60 = vsel %vm1193_vm10, %v1178_v14, %v883_v29 }
 0x210   : > { %v5042_v31 = vpop.permute.xlu1 %628 }
 0x211   : > { %v907_v50 = vpop.permute.xlu0 %906 }
 0x212   : > { %v1218_v57 = vsel %vm1193_vm10, %v1190_v63, %v907_v50 }
 0x214   : > { %v967_v1 = vpop.permute.xlu1 %966 }
 0x215   : > { %v1233_v21 = vsel %vm1221_vm11, %v1205_v38, %v967_v1  ;;  %v5072_v2 = vpop.permute.xlu0 %652  ;;  %v2054_v1 = vcombine.low %v4808_v16, %v4787_v45  ;;  %v5480_v16 = vld [vmem:[#allocation22_spill] sm:$0xff] }
 0x216   : > { %v1450_v41 = vrot.slane %v1233_v21, %v4115_v23  ;;  %v1039_v50 = vsel %vm1025_vm4, %v3402_v43, %v5480_v16 }
 0x217   : > { %v1067_v18 = vsel %vm1053_vm5, %v1039_v50, %v5481_v12  ;;  %v5134_v14 = vrot.slane %v2054_v1, %v4115_v23 }
 0x218   : > { %v1810_v17 = vcombine.low %v1443_v51, %v1450_v41  ;;  %v991_v3 = vpop.permute.xlu1 %990 }
 0x219   : > { %v1245_v40 = vsel %vm1221_vm11, %v1217_v61, %v991_v3  ;;  %v2250_v47 = vpop.f32.mrb[0].mxu1  ;;  %v969_v22 = vpop.permute.xlu0 %968 }
 0x21a   : > { %v1824_v7 = vrot.slane %v1810_v17, %v4115_v23  ;;  %v1614_v26 = vrot.slane %v1245_v40, %v4115_v23  ;;  %v5092_v55 = vadd.f32 %v2250_v47, %v2053_v10  ;;  %v1234_v11 = vsel %vm1221_vm11, %v1206_v60, %v969_v22  ;;  %v2205_v36 = vpop.f32.mrb[4].mxu0  ;;  %v3287_v6 = vpop.f32.mrb[1].mxu1 }
 0x21b   : > { %v1451_v44 = vcombine.high %v1234_v11, %v1234_v11  ;;  %v1458_v29 = vrot.slane %v1234_v11, %v4115_v23  ;;  %v2206_v32 = vadd.f32 %v2205_v36, %v2053_v10  ;;  %v3260_v49 = vpop.f32.mrb[5].mxu0  ;;  %v1095_v60 = vsel %vm1081_vm6, %v1067_v18, %v5025_v20  ;;  %v3403_v6 = vld [vmem:[%s3516_s24 + $0xc8] sm:$0xff] }
 0x21c   : > { %v1963_v33 = vcombine.low %v1607_v62, %v1614_v26  ;;  %v5100_v28 = vrot.slane %v5092_v55, %v4115_v23  ;;  %v715_v46 = vpop.permute.xlu1 %714  ;;  %v1825_v42 = vcombine.low %v1817_v4, %v1824_v7  ;;  %v2507_v40 = vcombine.high %v5092_v55, %v5092_v55 }
 0x21d   : > { %v1465_v25 = vrot.slane %v1451_v44, %v4115_v23  ;;  %v1466_v35 = vcombine.high %v1458_v29, %v1458_v29  ;;  %v5106_v13 = vrot.slane %v2206_v32, %v4115_v23  ;;  %v993_v48 = vpop.permute.xlu0 %992  ;;  %v2354_v62 = vcombine.high %v2206_v32, %v2206_v32 }
 0x21e   : > { %v2871_v38 = vrot.slane %v5100_v28, %v4115_v23  ;;  %3277 = vmatmul.mubr.msk.f32.gmra.mrb[16].mxu0 %vm2082_vm12, %v1825_v42  ;;  %v1977_v10 = vrot.slane %v1963_v33, %v4115_v23  ;;  %v1246_v37 = vsel %vm1221_vm11, %v1218_v57, %v993_v48  ;;  %v1123_v7 = vsel %vm1109_vm7, %v1095_v60, %v5042_v31  ;;  %v3404_v60 = vld [vmem:[%s3516_s24 + $0xd0] sm:$0xf] }
 0x21f   : > { %v1467_v15 = vcombine.high %v1465_v25, %v1465_v25  ;;  %v1826_v0 = vcombine.low %v1458_v29, %v1466_v35  ;;  %3279 = vmatprep.mubr.msk.f32.mxu0 %vm3455_vm3, %v5436_v19  ;;  %v2707_v34 = vrot.slane %v5106_v13, %v4115_v23  ;;  %v1615_v41 = vcombine.high %v1246_v37, %v1246_v37 }
 0x220   : > { %3078 = vst.msk [vmem:[%s4951_s4 + $0x70] sm:$0x3] %vm3065_vm13, %v2871_v38  ;;  %v799_v21 = vpop.permute.xlu1 %798  ;;  %v1622_v5 = vrot.slane %v1246_v37, %v4115_v23  ;;  %v1978_v4 = vcombine.low %v1970_v52, %v1977_v10  ;;  %v1051_v44 = vsel %vm1025_vm4, %v3403_v6, %v5482_v27  ;;  %v1151_v20 = vsel %vm1137_vm8, %v1123_v7, %v715_v46 }
 0x221   : > { %v1827_v51 = vcombine.low %v1465_v25, %v1467_v15  ;;  %v739_v58 = vpop.permute.xlu0 %738  ;;  %3066 = vst.msk [vmem:[%s4951_s4 + $0x10] sm:$0x3] %vm3065_vm13, %v2707_v34  ;;  %v1834_v61 = vrot.slane %v1826_v0, %v4115_v23  ;;  %v1629_v3 = vrot.slane %v1615_v41, %v4115_v23  ;;  %v1079_v55 = vsel %vm1053_vm5, %v1051_v44, %v5023_v39 }
 0x222   : > { %v1630_v47 = vcombine.high %v1622_v5, %v1622_v5  ;;  %3304 = vmatmul.mubr.msk.f32.gmra.mrb[12].mxu1 %vm2082_vm12, %v1978_v4  ;;  %v1179_v31 = vsel %vm1165_vm9, %v1151_v20, %v799_v21  ;;  %v2062_v49 = vcombine.low %v5134_v14, %v5048_v54  ;;  %v2521_v24 = vrot.slane %v2507_v40, %v4115_v23  ;;  %v5483_v40 = vld [vmem:[#allocation34_spill] sm:$0xff] }
 0x223   : > { %v1841_v17 = vrot.slane %v1827_v51, %v4115_v23  ;;  %v1631_v26 = vcombine.high %v1629_v3, %v1629_v3  ;;  %3306 = vmatprep.mubr.msk.f32.mxu1 %vm3455_vm3, %v5436_v19  ;;  %v2522_v33 = vcombine.high %v5100_v28, %v5100_v28  ;;  %v2368_v46 = vrot.slane %v2354_v62, %v4115_v23 }
 0x224   : > { %v885_v22 = vpop.permute.xlu1 %884  ;;  %v1979_v29 = vcombine.low %v1622_v5, %v1630_v47  ;;  %v2369_v39 = vcombine.high %v5106_v13, %v5106_v13  ;;  %v1107_v28 = vsel %vm1081_vm6, %v1079_v55, %v5029_v30  ;;  %v2523_v12 = vcombine.high %v2521_v24, %v2521_v24 }
 0x225   : > { %v823_v11 = vpop.permute.xlu0 %822  ;;  %v1842_v36 = vcombine.low %v1834_v61, %v1841_v17  ;;  %v1980_v32 = vcombine.low %v1629_v3, %v1631_v26  ;;  %v1207_v42 = vsel %vm1193_vm10, %v1179_v31, %v885_v22  ;;  %v1135_v57 = vsel %vm1109_vm7, %v1107_v28, %v5072_v2 }
 0x226   : > { %v1987_v25 = vrot.slane %v1979_v29, %v4115_v23  ;;  %v1163_v13 = vsel %vm1137_vm8, %v1135_v57, %v739_v58  ;;  %v2872_v16 = vcombine.low %v2522_v33, %v2521_v24  ;;  %v2708_v50 = vcombine.low %v2369_v39, %v2368_v46 }
 0x227   : > { %3280 = vmatmul.mubr.msk.f32.gmra.mrb[18].mxu0 %vm2082_vm12, %v1842_v36  ;;  %v1994_v35 = vrot.slane %v1980_v32, %v4115_v23  ;;  %v1191_v30 = vsel %vm1165_vm9, %v1163_v13, %v823_v11  ;;  %v2370_v17 = vcombine.high %v2368_v46, %v2368_v46  ;;  %v1052_v62 = vsel %vm1025_vm4, %v3404_v60, %v5483_v40 }
 0x228   : > { %v971_v59 = vpop.permute.xlu1 %970  ;;  %3282 = vmatprep.mubr.msk.f32.mxu0 %vm3455_vm3, %v5436_v19  ;;  %v2880_v7 = vrot.slane %v2872_v16, %v4115_v23  ;;  %v2716_v26 = vrot.slane %v2708_v50, %v4115_v23 }
 0x229   : > { %v1235_v48 = vsel %vm1221_vm11, %v1207_v42, %v971_v59  ;;  %v909_v63 = vpop.permute.xlu0 %908  ;;  %v1995_v15 = vcombine.low %v1987_v25, %v1994_v35 }
 0x22a   : > { %v1468_v38 = vcombine.high %v1235_v48, %v1235_v48  ;;  %v1475_v1 = vrot.slane %v1235_v48, %v4115_v23  ;;  %v1219_v58 = vsel %vm1193_vm10, %v1191_v30, %v909_v63  ;;  %v2063_v30 = vcombine.low %v5134_v14, %v4895_v9 }
 0x22b   : > { %v2255_v10 = vpop.f32.mrb[2].mxu1  ;;  %3307 = vmatmul.mubr.msk.f32.gmra.mrb[14].mxu1 %vm2082_vm12, %v1995_v15 }
 0x22c   : > { %v1482_v0 = vrot.slane %v1468_v38, %v4115_v23  ;;  %v1483_v34 = vcombine.high %v1475_v1, %v1475_v1  ;;  %v5177_v37 = vadd.f32 %v2255_v10, %v2062_v49  ;;  %v485_v21 = vpop.permute.xlu1 %484  ;;  %v2210_v43 = vpop.f32.mrb[6].mxu0  ;;  %3309 = vmatprep.mubr.msk.f32.mxu1 %vm3455_vm3, %v5436_v19 }
 0x22d   : > { %v2211_v52 = vadd.f32 %v2210_v43, %v2062_v49  ;;  %v3290_v2 = vpop.f32.mrb[3].mxu1  ;;  %v3263_v51 = vpop.f32.mrb[7].mxu0  ;;  %v1080_v27 = vsel %vm1053_vm5, %v1052_v62, %v485_v21 }
 0x22e   : > { %v1484_v41 = vcombine.high %v1482_v0, %v1482_v0  ;;  %v5184_v18 = vrot.slane %v5177_v37, %v4115_v23  ;;  %v995_v5 = vpop.permute.xlu0 %994  ;;  %v1843_v61 = vcombine.low %v1475_v1, %v1483_v34 }
 0x22f   : > { %v2378_v3 = vrot.slane %v2211_v52, %v4115_v23  ;;  %v1247_v4 = vsel %vm1221_vm11, %v1219_v58, %v995_v5  ;;  %v2371_v50 = vcombine.high %v2211_v52, %v2211_v52 }
 0x230   : > { %v1844_v47 = vcombine.low %v1482_v0, %v1484_v41  ;;  %v655_v22 = vpop.permute.xlu1 %654  ;;  %v2873_v11 = vcombine.low %v2523_v12, %v5184_v18  ;;  %v1632_v44 = vcombine.high %v1247_v4, %v1247_v4  ;;  %v1639_v20 = vrot.slane %v1247_v4, %v4115_v23 }
 0x231   : > { %v2709_v36 = vcombine.low %v2370_v17, %v2378_v3  ;;  %v1851_v55 = vrot.slane %v1843_v61, %v4115_v23  ;;  %v2385_v2 = vrot.slane %v2371_v50, %v4115_v23  ;;  %v2386_v51 = vcombine.high %v2378_v3, %v2378_v3 }
 0x232   : > { %v1858_v6 = vrot.slane %v1844_v47, %v4115_v23  ;;  %v569_v29 = vpop.permute.xlu0 %568  ;;  %v2887_v32 = vrot.slane %v2873_v11, %v4115_v23  ;;  %v1646_v24 = vrot.slane %v1632_v44, %v4115_v23  ;;  %v1647_v33 = vcombine.high %v1639_v20, %v1639_v20 }
 0x233   : > { %v2723_v31 = vrot.slane %v2709_v36, %v4115_v23  ;;  %v1108_v49 = vsel %vm1081_vm6, %v1080_v27, %v569_v29  ;;  %v2524_v41 = vcombine.high %v5177_v37, %v5177_v37  ;;  %v2725_v61 = vcombine.low %v2386_v51, %v2385_v2 }
 0x234   : > { %v825_v46 = vpop.permute.xlu1 %824  ;;  %v2888_v42 = vcombine.low %v2880_v7, %v2887_v32  ;;  %v1859_v39 = vcombine.low %v1851_v55, %v1858_v6  ;;  %v1648_v25 = vcombine.high %v1646_v24, %v1646_v24  ;;  %v1996_v35 = vcombine.low %v1639_v20, %v1647_v33 }
 0x235   : > { %v2724_v59 = vcombine.low %v2716_v26, %v2723_v31  ;;  %v1136_v48 = vsel %vm1109_vm7, %v1108_v49, %v655_v22  ;;  %v2387_v17 = vcombine.high %v2385_v2, %v2385_v2  ;;  %v2539_v52 = vcombine.high %v5184_v18, %v5184_v18 }
 0x236   : > { %v741_v63 = vpop.permute.xlu0 %740  ;;  %3079 = vst.msk [vmem:[%s4951_s4 + $0x78] sm:$0xff] %vm1109_vm7, %v2888_v42  ;;  %3283 = vmatmul.mubr.msk.f32.gmra.mrb[20].mxu0 %vm2082_vm12, %v1859_v39  ;;  %v1997_v38 = vcombine.low %v1646_v24, %v1648_v25  ;;  %v2004_v57 = vrot.slane %v1996_v35, %v4115_v23  ;;  %v2733_v37 = vrot.slane %v2725_v61, %v4115_v23 }
 0x237   : > { %3067 = vst.msk [vmem:[%s4951_s4 + $0x18] sm:$0xff] %vm1109_vm7, %v2724_v59  ;;  %v1164_v28 = vsel %vm1137_vm8, %v1136_v48, %v741_v63  ;;  %v2064_v29 = vcombine.low %v4898_v8, %v4895_v9 }
 0x238   : > { %v997_v1 = vpop.permute.xlu1 %996  ;;  %v2011_v10 = vrot.slane %v1997_v38, %v4115_v23  ;;  %v1192_v15 = vsel %vm1165_vm9, %v1164_v28, %v825_v46 }
 0x23a   : > { %v911_v13 = vpop.permute.xlu0 %910  ;;  %v2012_v21 = vcombine.low %v2004_v57, %v2011_v10 }
 0x23b   : > { %v1220_v0 = vsel %vm1193_vm10, %v1192_v15, %v911_v13 }
 0x23c   : > { %v1248_v34 = vsel %vm1221_vm11, %v1220_v0, %v997_v1  ;;  %3310 = vmatmul.mubr.msk.f32.gmra.mrb[16].mxu1 %vm2082_vm12, %v2012_v21 }
 0x23d   : > { %v1655_v43 = vrot.slane %v1248_v34, %v4115_v23  ;;  %3312 = vmatprep.mubr.msk.f32.mxu1 %vm3455_vm3, %v5436_v19  ;;  %v2538_v19 = vrot.slane %v2524_v41, %v4115_v23  ;;  %v2065_v41 = vcombine.low %v4898_v8, %v5045_v53 }
 0x23f   : > { %v2019_v16 = vrot.slane %v1655_v43, %v4115_v23  ;;  %v2889_v11 = vcombine.low %v2539_v52, %v2538_v19  ;;  %v2540_v36 = vcombine.high %v2538_v19, %v2538_v19 }
 0x241   : > { %3313 = vmatmul.mubr.msk.f32.gmra.mrb[18].mxu1 %vm2082_vm12, %v2019_v16  ;;  %v2897_v55 = vrot.slane %v2889_v11, %v4115_v23 }
 0x261   : > { %v2215_v58 = vpop.f32.mrb[8].mxu0 }
 0x262   : > { %v2216_v12 = vadd.f32 %v2215_v58, %v2063_v30  ;;  %v3266_v5 = vpop.f32.mrb[9].mxu0 }
 0x264   : > { %v2395_v4 = vrot.slane %v2216_v12, %v4115_v23  ;;  %v2388_v22 = vcombine.high %v2216_v12, %v2216_v12 }
 0x266   : > { %v2403_v60 = vcombine.high %v2395_v4, %v2395_v4  ;;  %v2726_v40 = vcombine.low %v2387_v17, %v2395_v4  ;;  %v2260_v3 = vpop.f32.mrb[4].mxu1  ;;  %v2402_v20 = vrot.slane %v2388_v22, %v4115_v23 }
 0x267   : > { %v2261_v62 = vadd.f32 %v2260_v3, %v2063_v30  ;;  %v3293_v47 = vpop.f32.mrb[5].mxu1 }
 0x268   : > { %v2740_v7 = vrot.slane %v2726_v40, %v4115_v23  ;;  %v2748_v26 = vrot.slane %v2403_v60, %v4115_v23  ;;  %v2404_v46 = vcombine.high %v2402_v20, %v2402_v20 }
 0x269   : > { %v2548_v6 = vrot.slane %v2261_v62, %v4115_v23  ;;  %v2541_v32 = vcombine.high %v2261_v62, %v2261_v62 }
 0x26a   : > { %v2741_v27 = vcombine.low %v2733_v37, %v2740_v7  ;;  %3069 = vst.msk [vmem:[%s4951_s4 + $0x28] sm:$0x3] %vm3065_vm13, %v2748_v26  ;;  %v2749_v25 = vcombine.low %v2402_v20, %v2404_v46 }
 0x26b   : > { %v2556_v18 = vcombine.high %v2548_v6, %v2548_v6  ;;  %v2890_v44 = vcombine.low %v2540_v36, %v2548_v6  ;;  %v2555_v39 = vrot.slane %v2541_v32, %v4115_v23 }
 0x26c   : > { %3068 = vst.msk [vmem:[%s4951_s4 + $0x20] sm:$0xff] %vm1109_vm7, %v2741_v27  ;;  %v2757_v10 = vrot.slane %v2749_v25, %v4115_v23 }
 0x26d   : > { %v2904_v31 = vrot.slane %v2890_v44, %v4115_v23  ;;  %v2912_v49 = vrot.slane %v2556_v18, %v4115_v23  ;;  %v2557_v63 = vcombine.high %v2555_v39, %v2555_v39 }
 0x26f   : > { %v2905_v24 = vcombine.low %v2897_v55, %v2904_v31  ;;  %3081 = vst.msk [vmem:[%s4951_s4 + $0x88] sm:$0x3] %vm3065_vm13, %v2912_v49  ;;  %v2220_v33 = vpop.f32.mrb[10].mxu0  ;;  %v2913_v13 = vcombine.low %v2555_v39, %v2557_v63  ;;  %v2066_v31 = vcombine.low %v5048_v54, %v5134_v14 }
 0x270   : > { %v2221_v42 = vadd.f32 %v2220_v33, %v2064_v29  ;;  %v3269_v59 = vpop.f32.mrb[11].mxu0 }
 0x271   : > { %3080 = vst.msk [vmem:[%s4951_s4 + $0x80] sm:$0xff] %vm1109_vm7, %v2905_v24  ;;  %v2921_v43 = vrot.slane %v2913_v13, %v4115_v23 }
 0x272   : > { %v2412_v9 = vrot.slane %v2221_v42, %v4115_v23  ;;  %v2405_v30 = vcombine.high %v2221_v42, %v2221_v42 }
 0x274   : > { %v2420_v35 = vcombine.high %v2412_v9, %v2412_v9  ;;  %v2265_v48 = vpop.f32.mrb[6].mxu1  ;;  %v2419_v2 = vrot.slane %v2405_v30, %v4115_v23 }
 0x275   : > { %v2266_v28 = vadd.f32 %v2265_v48, %v2064_v29  ;;  %v3296_v38 = vpop.f32.mrb[7].mxu1 }
 0x276   : > { %v2750_v1 = vcombine.low %v2412_v9, %v2420_v35  ;;  %v2421_v58 = vcombine.high %v2419_v2, %v2419_v2 }
 0x277   : > { %v2565_v57 = vrot.slane %v2266_v28, %v4115_v23  ;;  %v2558_v51 = vcombine.high %v2266_v28, %v2266_v28 }
 0x278   : > { %v2764_v15 = vrot.slane %v2750_v1, %v4115_v23  ;;  %v2766_v52 = vcombine.low %v2419_v2, %v2421_v58 }
 0x279   : > { %v2573_v0 = vcombine.high %v2565_v57, %v2565_v57  ;;  %v2572_v5 = vrot.slane %v2558_v51, %v4115_v23 }
 0x27a   : > { %v2765_v34 = vcombine.low %v2757_v10, %v2764_v15  ;;  %v2774_v26 = vrot.slane %v2766_v52, %v4115_v23 }
 0x27b   : > { %v2914_v21 = vcombine.low %v2565_v57, %v2573_v0  ;;  %v2574_v40 = vcombine.high %v2572_v5, %v2572_v5 }
 0x27c   : > { %3070 = vst.msk [vmem:[%s4951_s4 + $0x30] sm:$0xff] %vm1109_vm7, %v2765_v34 }
 0x27d   : > { %v2928_v16 = vrot.slane %v2914_v21, %v4115_v23  ;;  %v2930_v11 = vcombine.low %v2572_v5, %v2574_v40 }
 0x27f   : > { %v2929_v50 = vcombine.low %v2921_v43, %v2928_v16  ;;  %v2938_v29 = vrot.slane %v2930_v11, %v4115_v23 }
 0x281   : > { %3082 = vst.msk [vmem:[%s4951_s4 + $0x90] sm:$0xff] %vm1109_vm7, %v2929_v50 }
 0x2a6   : > { %v2225_v12 = vpop.f32.mrb[12].mxu0 }
 0x2a7   : > { %v2226_v61 = vadd.f32 %v2225_v12, %v2065_v41  ;;  %v3272_v17 = vpop.f32.mrb[13].mxu0 }
 0x2a9   : > { %v2422_v4 = vcombine.high %v2226_v61, %v2226_v61  ;;  %v2429_v19 = vrot.slane %v2226_v61, %v4115_v23 }
 0x2aa   : > { %v2270_v60 = vpop.f32.mrb[8].mxu1 }
 0x2ab   : > { %v2436_v3 = vrot.slane %v2422_v4, %v4115_v23  ;;  %v2437_v62 = vcombine.high %v2429_v19, %v2429_v19  ;;  %v2271_v47 = vadd.f32 %v2270_v60, %v2065_v41  ;;  %v3299_v37 = vpop.f32.mrb[9].mxu1 }
 0x2ad   : > { %v2767_v8 = vcombine.low %v2429_v19, %v2437_v62  ;;  %v2789_v53 = vrot.slane %v2436_v3, %v4115_v23  ;;  %v2575_v22 = vcombine.high %v2271_v47, %v2271_v47  ;;  %v2582_v7 = vrot.slane %v2271_v47, %v4115_v23 }
 0x2ae   : > { %v2438_v35 = vcombine.high %v2436_v3, %v2436_v3 }
 0x2af   : > { %v2781_v36 = vrot.slane %v2767_v8, %v4115_v23  ;;  %3072 = vst.msk [vmem:[%s4951_s4 + $0x40] sm:$0x3] %vm3065_vm13, %v2789_v53  ;;  %v2589_v6 = vrot.slane %v2575_v22, %v4115_v23  ;;  %v2590_v27 = vcombine.high %v2582_v7, %v2582_v7 }
 0x2b1   : > { %v2782_v18 = vcombine.low %v2774_v26, %v2781_v36  ;;  %v2931_v44 = vcombine.low %v2582_v7, %v2590_v27  ;;  %v2953_v20 = vrot.slane %v2589_v6, %v4115_v23  ;;  %v2591_v39 = vcombine.high %v2589_v6, %v2589_v6 }
 0x2b3   : > { %3071 = vst.msk [vmem:[%s4951_s4 + $0x38] sm:$0xff] %vm1109_vm7, %v2782_v18  ;;  %v2945_v55 = vrot.slane %v2931_v44, %v4115_v23 }
 0x2b4   : > { %3084 = vst.msk [vmem:[%s4951_s4 + $0xa0] sm:$0x3] %vm3065_vm13, %v2953_v20 }
 0x2b5   : > { %v2946_v32 = vcombine.low %v2938_v29, %v2945_v55 }
 0x2b7   : > { %3083 = vst.msk [vmem:[%s4951_s4 + $0x98] sm:$0xff] %vm1109_vm7, %v2946_v32 }
 0x2cd   : > { %v2275_v49 = vpop.f32.mrb[10].mxu1 }
 0x2ce   : > { %v2276_v24 = vadd.f32 %v2275_v49, %v2066_v31  ;;  %v2230_v33 = vpop.f32.mrb[14].mxu0  ;;  %v3302_v46 = vpop.f32.mrb[11].mxu1 }
 0x2cf   : > { %v2231_v42 = vadd.f32 %v2230_v33, %v2066_v31  ;;  %v3275_v59 = vpop.f32.mrb[15].mxu0 }
 0x2d0   : > { %v2592_v9 = vcombine.high %v2276_v24, %v2276_v24  ;;  %v2599_v25 = vrot.slane %v2276_v24, %v4115_v23 }
 0x2d1   : > { %v2439_v48 = vcombine.high %v2231_v42, %v2231_v42  ;;  %v2446_v63 = vrot.slane %v2231_v42, %v4115_v23 }
 0x2d2   : > { %v2606_v28 = vrot.slane %v2592_v9, %v4115_v23  ;;  %v2607_v38 = vcombine.high %v2599_v25, %v2599_v25  ;;  %v2954_v54 = vcombine.low %v2591_v39, %v2599_v25 }
 0x2d3   : > { %v2453_v14 = vrot.slane %v2439_v48, %v4115_v23  ;;  %v2454_v1 = vcombine.high %v2446_v63, %v2446_v63  ;;  %v2790_v57 = vcombine.low %v2438_v35, %v2446_v63 }
 0x2d4   : > { %v2955_v10 = vcombine.low %v2607_v38, %v2606_v28  ;;  %v2962_v13 = vrot.slane %v2954_v54, %v4115_v23  ;;  %v2608_v37 = vcombine.high %v2606_v28, %v2606_v28 }
 0x2d5   : > { %v2791_v15 = vcombine.low %v2454_v1, %v2453_v14  ;;  %v2798_v34 = vrot.slane %v2790_v57, %v4115_v23  ;;  %v2455_v51 = vcombine.high %v2453_v14, %v2453_v14 }
 0x2d6   : > { %v2969_v0 = vrot.slane %v2955_v10, %v4115_v23 }
 0x2d7   : > { %v2805_v21 = vrot.slane %v2791_v15, %v4115_v23 }
 0x2d8   : > { %v2970_v43 = vcombine.low %v2962_v13, %v2969_v0 }
 0x2d9   : > { %v2806_v16 = vcombine.low %v2798_v34, %v2805_v21 }
 0x2da   : > { %3085 = vst.msk [vmem:[%s4951_s4 + $0xa8] sm:$0xff] %vm1109_vm7, %v2970_v43 }
 0x2db   : > { %3073 = vst.msk [vmem:[%s4951_s4 + $0x48] sm:$0xff] %vm1109_vm7, %v2806_v16 }
 0x2f1   : > { %v2235_v50 = vpop.f32.mrb[16].mxu0 }
 0x2f2   : > { %v2236_v30 = vadd.f32 %v2235_v50, %v2066_v31  ;;  %v3278_v2 = vpop.f32.mrb[17].mxu0 }
 0x2f4   : > { %v2456_v41 = vcombine.high %v2236_v30, %v2236_v30  ;;  %v2463_v58 = vrot.slane %v2236_v30, %v4115_v23 }
 0x2f5   : > { %v2280_v19 = vpop.f32.mrb[12].mxu1 }
 0x2f6   : > { %v2470_v12 = vrot.slane %v2456_v41, %v4115_v23  ;;  %v2471_v5 = vcombine.high %v2463_v58, %v2463_v58  ;;  %v2807_v61 = vcombine.low %v2455_v51, %v2463_v58  ;;  %v2281_v52 = vadd.f32 %v2280_v19, %v2066_v31  ;;  %v3305_v60 = vpop.f32.mrb[13].mxu1 }
 0x2f8   : > { %v2472_v17 = vcombine.high %v2470_v12, %v2470_v12  ;;  %v2808_v4 = vcombine.low %v2471_v5, %v2470_v12  ;;  %v2815_v40 = vrot.slane %v2807_v61, %v4115_v23  ;;  %v2609_v8 = vcombine.high %v2281_v52, %v2281_v52 }
 0x2f9   : > { %v2616_v53 = vrot.slane %v2281_v52, %v4115_v23  ;;  %v2073_v5 = vrot.slane %v4787_v45, %v4115_v23 }
 0x2fa   : > { %v2822_v3 = vrot.slane %v2808_v4, %v4115_v23  ;;  %v2830_v62 = vrot.slane %v2472_v17, %v4115_v23  ;;  %v2240_v47 = vpop.f32.mrb[18].mxu0  ;;  %v2623_v11 = vrot.slane %v2609_v8, %v4115_v23 }
 0x2fb   : > { %v2241_v22 = vadd.f32 %v2240_v47, %v4913_v56  ;;  %v3281_v7 = vpop.f32.mrb[19].mxu0  ;;  %v2624_v36 = vcombine.high %v2616_v53, %v2616_v53  ;;  %v2971_v6 = vcombine.low %v2608_v37, %v2616_v53 }
 0x2fc   : > { %v2823_v26 = vcombine.low %v2815_v40, %v2822_v3  ;;  %3075 = vst.msk [vmem:[%s4951_s4 + $0x58] sm:$0x3] %vm3065_vm13, %v2830_v62  ;;  %v2625_v44 = vcombine.high %v2623_v11, %v2623_v11 }
 0x2fd   : > { %v2473_v27 = vcombine.high %v2241_v22, %v2241_v22  ;;  %v2480_v18 = vrot.slane %v2241_v22, %v4115_v23  ;;  %v2972_v20 = vcombine.low %v2624_v36, %v2623_v11  ;;  %v2979_v55 = vrot.slane %v2971_v6, %v4115_v23 }
 0x2fe   : > { %3074 = vst.msk [vmem:[%s4951_s4 + $0x50] sm:$0xff] %vm1109_vm7, %v2823_v26  ;;  %v2285_v31 = vpop.f32.mrb[14].mxu1  ;;  %v2994_v24 = vrot.slane %v2625_v44, %v4115_v23 }
 0x2ff   : > { %v2487_v29 = vrot.slane %v2473_v27, %v4115_v23  ;;  %v2488_v32 = vcombine.high %v2480_v18, %v2480_v18  ;;  %v2986_v49 = vrot.slane %v2972_v20, %v4115_v23  ;;  %v2286_v46 = vadd.f32 %v2285_v31, %v4913_v56  ;;  %v3308_v42 = vpop.f32.mrb[15].mxu1 }
 0x300   : > { %3087 = vst.msk [vmem:[%s4951_s4 + $0xb8] sm:$0x3] %vm3065_vm13, %v2994_v24 }
 0x301   : > { %v2489_v33 = vcombine.high %v2487_v29, %v2487_v29  ;;  %v2831_v59 = vcombine.low %v2480_v18, %v2488_v32  ;;  %v2987_v39 = vcombine.low %v2979_v55, %v2986_v49  ;;  %v2626_v25 = vcombine.high %v2286_v46, %v2286_v46 }
 0x302   : > { %v2633_v35 = vrot.slane %v2286_v46, %v4115_v23 }
 0x303   : > { %v2832_v9 = vcombine.low %v2487_v29, %v2489_v33  ;;  %3086 = vst.msk [vmem:[%s4951_s4 + $0xb0] sm:$0xff] %vm1109_vm7, %v2987_v39  ;;  %v2839_v48 = vrot.slane %v2831_v59, %v4115_v23  ;;  %v2640_v28 = vrot.slane %v2626_v25, %v4115_v23 }
 0x304   : > { %v2641_v38 = vcombine.high %v2633_v35, %v2633_v35 }
 0x305   : > { %v2846_v63 = vrot.slane %v2832_v9, %v4115_v23  ;;  %v2642_v14 = vcombine.high %v2640_v28, %v2640_v28 }
 0x306   : > { %v2995_v1 = vcombine.low %v2633_v35, %v2641_v38 }
 0x307   : > { %v2847_v54 = vcombine.low %v2839_v48, %v2846_v63  ;;  %v2996_v57 = vcombine.low %v2640_v28, %v2642_v14 }
 0x308   : > { %v3003_v15 = vrot.slane %v2995_v1, %v4115_v23 }
 0x309   : > { %3076 = vst.msk [vmem:[%s4951_s4 + $0x60] sm:$0xff] %vm1109_vm7, %v2847_v54  ;;  %v2245_v10 = vpop.f32.mrb[20].mxu0  ;;  %v3010_v13 = vrot.slane %v2996_v57, %v4115_v23 }
 0x30a   : > { %v2246_v0 = vadd.f32 %v2245_v10, %v4913_v56  ;;  %v3284_v34 = vpop.f32.mrb[21].mxu0 }
 0x30b   : > { %v3011_v21 = vcombine.low %v3003_v15, %v3010_v13 }
 0x30c   : > { %v2490_v43 = vcombine.high %v2246_v0, %v2246_v0  ;;  %v2497_v16 = vrot.slane %v2246_v0, %v4115_v23 }
 0x30d   : > { %3088 = vst.msk [vmem:[%s4951_s4 + $0xc0] sm:$0xff] %vm1109_vm7, %v3011_v21 }
 0x30e   : > { %v2504_v50 = vrot.slane %v2490_v43, %v4115_v23  ;;  %v2505_v30 = vcombine.high %v2497_v16, %v2497_v16 }
 0x30f   : > { %v2290_v41 = vpop.f32.mrb[16].mxu1 }
 0x310   : > { %v2506_v2 = vcombine.high %v2504_v50, %v2504_v50  ;;  %v2848_v51 = vcombine.low %v2497_v16, %v2505_v30  ;;  %v2291_v58 = vadd.f32 %v2290_v41, %v4913_v56  ;;  %v3311_v12 = vpop.f32.mrb[17].mxu1 }
 0x312   : > { %v2849_v61 = vcombine.low %v2504_v50, %v2506_v2  ;;  %v2643_v17 = vcombine.high %v2291_v58, %v2291_v58  ;;  %v2650_v4 = vrot.slane %v2291_v58, %v4115_v23  ;;  %v2856_v19 = vrot.slane %v2848_v51, %v4115_v23 }
 0x314   : > { %v2863_v52 = vrot.slane %v2849_v61, %v4115_v23  ;;  %v2295_v60 = vpop.f32.mrb[18].mxu1  ;;  %v2657_v40 = vrot.slane %v2643_v17, %v4115_v23  ;;  %v2658_v3 = vcombine.high %v2650_v4, %v2650_v4 }
 0x315   : > { %v2296_v56 = vadd.f32 %v2295_v60, %v2073_v5  ;;  %v3314_v62 = vpop.f32.mrb[19].mxu1 }
 0x316   : > { %v2864_v47 = vcombine.low %v2856_v19, %v2863_v52  ;;  %v2659_v37 = vcombine.high %v2657_v40, %v2657_v40  ;;  %v3012_v8 = vcombine.low %v2650_v4, %v2658_v3 }
 0x317   : > { %v2666_v45 = vrot.slane %v2296_v56, %v4115_v23 }
 0x318   : > { %3077 = vst.msk [vmem:[%s4951_s4 + $0x68] sm:$0xff] %vm1109_vm7, %v2864_v47  ;;  %v3013_v53 = vcombine.low %v2657_v40, %v2659_v37  ;;  %v3020_v7 = vrot.slane %v3012_v8, %v4115_v23 }
 0x319   : > { %v3035_v22 = vrot.slane %v2666_v45, %v4115_v23 }
 0x31a   : > { %v3027_v26 = vrot.slane %v3013_v53, %v4115_v23 }
 0x31b   : > { %3090 = vst.msk [vmem:[%s4951_s4 + $0xd0] sm:$0x3] %vm3065_vm13, %v3035_v22 }
 0x31c   : > { %v3028_v11 = vcombine.low %v3020_v7, %v3027_v26 }
 0x31e   : > { %3089 = vst.msk [vmem:[%s4951_s4 + $0xc8] sm:$0xff] %vm1109_vm7, %v3028_v11 }
 0x31f PF: > { %s13_s16 = sadd.s32 1, %s3443_s16   ;;  %s5484_s12 = smov %s3435_s14 }
 0x320   : > { %p10_p7 = scmp.ge.s32.totalorder %s13_s16, 6   ;;  %s5485_s13 = smov %s3439_s15 }
 0x321   : > { %s5486_s14 = smov %s5489_s17  ;;  %s5487_s15 = smov %s5493_s18 }
 0x322   :  { %12 = sbr.rel (!%p10_p7) target bundleno = 3 (0x3), region = 63 }

</bundles_post_ra>
